<compile_context>
chip_gen: v7x
topology: tpu7x:2x2x1
jax: 0.10.0
libtpu: 0.0.40
codegen_flags: <defaults>
</compile_context>

<pallas_src>
import functools
import math

import numpy as np
import jax
import jax.numpy as jnp
from jax.experimental import pallas as pl
from jax.experimental.pallas import tpu as pltpu


_VMEM_LIMIT = 48 * 1024 * 1024   # scoped VMEM budget; valid on v5e/v6e/v7x
_ROW_TILE = 512                  # target rows per block


def _row_tile(m, target=_ROW_TILE):
    """Largest row tile <= target that divides m and is a multiple of 8."""
    if m <= target:
        return m
    t = (target // 8) * 8
    while t >= 8:
        if m % t == 0:
            return t
        t -= 8
    return m


def _mosaic_params():
    return pltpu.CompilerParams(
        dimension_semantics=("parallel",),
        vmem_limit_bytes=_VMEM_LIMIT)


# ----------------------------------------------------------------------------
# Kernel 1: matmul + bias (+ optional ReLU), row-tiled.  Used for the fused
# QKV projection (W = [Wq | Wk | Wv]).
# ----------------------------------------------------------------------------
def _matmul_bias_kernel(x_ref, wt_ref, b_ref, o_ref, *, activation):
    y = jnp.dot(x_ref[...], wt_ref[...], preferred_element_type=jnp.float32)
    y = y + b_ref[...]
    if activation == "relu":
        y = jnp.maximum(y, 0.0)
    o_ref[...] = y.astype(o_ref.dtype)


def matmul_bias(x, wt, b, activation=None):
    lead = x.shape[:-1]
    K = x.shape[-1]
    N = wt.shape[1]
    x2 = x.reshape(-1, K)
    M = x2.shape[0]
    tm = _row_tile(M)
    out = pl.pallas_call(
        functools.partial(_matmul_bias_kernel, activation=activation),
        out_shape=jax.ShapeDtypeStruct((M, N), x.dtype),
        grid=(M // tm,),
        in_specs=[pl.BlockSpec((tm, K), lambda i: (i, 0)),
                  pl.BlockSpec((K, N), lambda i: (0, 0)),   # weight resident
                  pl.BlockSpec((1, N), lambda i: (0, 0))],
        out_specs=pl.BlockSpec((tm, N), lambda i: (i, 0)),
        compiler_params=_mosaic_params(),
    )(x2, wt, b.reshape(1, N))
    return out.reshape(*lead, N)


# ----------------------------------------------------------------------------
# Kernel 2: matmul + bias + residual add + LayerNorm epilogue
#           (norm1(x + Wo @ attn_out + bo)).
# ----------------------------------------------------------------------------
def _matmul_add_ln_kernel(x_ref, wt_ref, b_ref, res_ref, g_ref, beta_ref, o_ref,
                          *, eps):
    y = jnp.dot(x_ref[...], wt_ref[...], preferred_element_type=jnp.float32)
    y = y + b_ref[...] + res_ref[...]
    mean = jnp.mean(y, axis=-1, keepdims=True)
    yc = y - mean
    var = jnp.mean(yc * yc, axis=-1, keepdims=True)
    inv = jax.lax.rsqrt(var + eps)
    o_ref[...] = (yc * inv * g_ref[...] + beta_ref[...]).astype(o_ref.dtype)


def matmul_add_layernorm(x, wt, b, res, gamma, beta, eps=1e-5):
    lead = res.shape[:-1]
    K = x.shape[-1]
    C = wt.shape[1]
    x2 = x.reshape(-1, K)
    r2 = res.reshape(-1, C)
    M = x2.shape[0]
    tm = _row_tile(M)
    out = pl.pallas_call(
        functools.partial(_matmul_add_ln_kernel, eps=eps),
        out_shape=jax.ShapeDtypeStruct((M, C), res.dtype),
        grid=(M // tm,),
        in_specs=[pl.BlockSpec((tm, K), lambda i: (i, 0)),
                  pl.BlockSpec((K, C), lambda i: (0, 0)),
                  pl.BlockSpec((1, C), lambda i: (0, 0)),
                  pl.BlockSpec((tm, C), lambda i: (i, 0)),
                  pl.BlockSpec((1, C), lambda i: (0, 0)),
                  pl.BlockSpec((1, C), lambda i: (0, 0))],
        out_specs=pl.BlockSpec((tm, C), lambda i: (i, 0)),
        compiler_params=_mosaic_params(),
    )(x2, wt, b.reshape(1, C), r2, gamma.reshape(1, C), beta.reshape(1, C))
    return out.reshape(*lead, C)


# ----------------------------------------------------------------------------
# Kernel 3: fused FFN:  norm2(x + conv2(relu(conv1(x)))), intermediate in VMEM.
# ----------------------------------------------------------------------------
def _ffn_ln_kernel(x_ref, w1t_ref, b1_ref, w2t_ref, b2_ref, g_ref, beta_ref,
                   o_ref, *, eps):
    x = x_ref[...]
    h = jnp.dot(x, w1t_ref[...], preferred_element_type=jnp.float32) + b1_ref[...]
    h = jnp.maximum(h, 0.0)                                   # ReLU
    y = jnp.dot(h, w2t_ref[...], preferred_element_type=jnp.float32) + b2_ref[...]
    y = y + x                                                 # residual (dropout p=0)
    mean = jnp.mean(y, axis=-1, keepdims=True)
    yc = y - mean
    var = jnp.mean(yc * yc, axis=-1, keepdims=True)
    inv = jax.lax.rsqrt(var + eps)
    o_ref[...] = (yc * inv * g_ref[...] + beta_ref[...]).astype(o_ref.dtype)


def ffn_layernorm(x, w1t, b1, w2t, b2, gamma, beta, eps=1e-5):
    lead = x.shape[:-1]
    C = x.shape[-1]
    inter = w1t.shape[1]
    x2 = x.reshape(-1, C)
    M = x2.shape[0]
    tm = _row_tile(M)
    out = pl.pallas_call(
        functools.partial(_ffn_ln_kernel, eps=eps),
        out_shape=jax.ShapeDtypeStruct((M, C), x.dtype),
        grid=(M // tm,),
        in_specs=[pl.BlockSpec((tm, C), lambda i: (i, 0)),
                  pl.BlockSpec((C, inter), lambda i: (0, 0)),
                  pl.BlockSpec((1, inter), lambda i: (0, 0)),
                  pl.BlockSpec((inter, C), lambda i: (0, 0)),
                  pl.BlockSpec((1, C), lambda i: (0, 0)),
                  pl.BlockSpec((1, C), lambda i: (0, 0)),
                  pl.BlockSpec((1, C), lambda i: (0, 0))],
        out_specs=pl.BlockSpec((tm, C), lambda i: (i, 0)),
        compiler_params=_mosaic_params(),
    )(x2, w1t, b1.reshape(1, inter), w2t, b2.reshape(1, C),
      gamma.reshape(1, C), beta.reshape(1, C))
    return out.reshape(*lead, C)


# ----------------------------------------------------------------------------
# Kernel 4: plain LayerNorm (final encoder norm).
# ----------------------------------------------------------------------------
def _layernorm_kernel(x_ref, g_ref, beta_ref, o_ref, *, eps):
    x = x_ref[...]
    mean = jnp.mean(x, axis=-1, keepdims=True)
    xc = x - mean
    var = jnp.mean(xc * xc, axis=-1, keepdims=True)
    inv = jax.lax.rsqrt(var + eps)
    o_ref[...] = (xc * inv * g_ref[...] + beta_ref[...]).astype(o_ref.dtype)


def layernorm(x, gamma, beta, eps=1e-5):
    lead = x.shape[:-1]
    C = x.shape[-1]
    x2 = x.reshape(-1, C)
    M = x2.shape[0]
    tm = _row_tile(M)
    out = pl.pallas_call(
        functools.partial(_layernorm_kernel, eps=eps),
        out_shape=jax.ShapeDtypeStruct((M, C), x.dtype),
        grid=(M // tm,),
        in_specs=[pl.BlockSpec((tm, C), lambda i: (i, 0)),
                  pl.BlockSpec((1, C), lambda i: (0, 0)),
                  pl.BlockSpec((1, C), lambda i: (0, 0))],
        out_specs=pl.BlockSpec((tm, C), lambda i: (i, 0)),
        compiler_params=_mosaic_params(),
    )(x2, gamma.reshape(1, C), beta.reshape(1, C))
    return out.reshape(*lead, C)


# ----------------------------------------------------------------------------
# Kernel 5: ProbAttention core for the selected (top-u) queries.
# Grid over B only (all H heads per block); K passed pre-transposed (D, Lk).
# ----------------------------------------------------------------------------
def _prob_attn_kernel(q_ref, kt_ref, v_ref, o_ref, *, scale):
    s = jnp.einsum("hud,hdk->huk", q_ref[...], kt_ref[...],
                   preferred_element_type=jnp.float32) * scale
    m = jnp.max(s, axis=-1, keepdims=True)
    p = jnp.exp(s - m)
    inv = pl.reciprocal(jnp.sum(p, axis=-1, keepdims=True), approx=True)
    attn = p * inv
    ctx = jnp.einsum("huk,hkd->hud", attn, v_ref[...],
                     preferred_element_type=jnp.float32)
    o_ref[...] = ctx.astype(o_ref.dtype)


def prob_attn_core(q_red, kT, v, scale):
    # q_red: (B, H, u, D), kT: (B, H, D, Lk), v: (B, H, Lk, D) -> (B, H, u, D)
    B, H, u, D = q_red.shape
    Lk = v.shape[2]
    return pl.pallas_call(
        functools.partial(_prob_attn_kernel, scale=scale),
        out_shape=jax.ShapeDtypeStruct((B, H, u, D), q_red.dtype),
        grid=(B,),
        in_specs=[pl.BlockSpec((None, H, u, D), lambda b: (b, 0, 0, 0)),
                  pl.BlockSpec((None, H, D, Lk), lambda b: (b, 0, 0, 0)),
                  pl.BlockSpec((None, H, Lk, D), lambda b: (b, 0, 0, 0))],
        out_specs=pl.BlockSpec((None, H, u, D), lambda b: (b, 0, 0, 0)),
        compiler_params=_mosaic_params(),
    )(q_red, kT, v)


# ----------------------------------------------------------------------------
# Kernel 6a/6b: Distilling layer
#   pass 1: circular k=3 conv + per-batch BatchNorm partial sums (grid over B)
#   pass 2: BN(train stats) + ELU + MaxPool1d(k=3, s=2, p=1)   (grid over B)
# ----------------------------------------------------------------------------
def _distill_conv_kernel(x_ref, w0t_ref, w1t_ref, w2t_ref, bias_ref,
                         h_ref, stat_ref):
    x = x_ref[...]                                            # (L, C)
    L = x.shape[0]
    # circular taps x[t-1], x[t], x[t+1]: three row-wise matmuls over C.
    x_prev = jnp.concatenate([x[L - 1:L, :], x[:L - 1, :]], axis=0)
    x_next = jnp.concatenate([x[1:, :], x[0:1, :]], axis=0)
    h = (jnp.dot(x_prev, w0t_ref[...], preferred_element_type=jnp.float32)
         + jnp.dot(x, w1t_ref[...], preferred_element_type=jnp.float32)
         + jnp.dot(x_next, w2t_ref[...], preferred_element_type=jnp.float32)
         + bias_ref[...])
    h_ref[...] = h
    stat_ref[...] = jnp.concatenate(
        [jnp.sum(h, axis=0, keepdims=True),
         jnp.sum(h * h, axis=0, keepdims=True)], axis=0)      # (2, C) partial stats


def _distill_pool_kernel(he_ref, ho_ref, a_ref, b_ref, o_ref):
    # he_ref: rows 2i of the conv output (L_out, C); ho_ref: rows 2i+1.
    a = a_ref[...]
    b = b_ref[...]

    def _bn_elu(z):
        z = z * a + b                                         # folded BN affine
        return jnp.where(z > 0, z, jnp.exp(jnp.minimum(z, 0.0)) - 1.0)  # ELU

    e_even = _bn_elu(he_ref[...])                             # rows 2i
    e_odd = _bn_elu(ho_ref[...])                              # rows 2i+1
    L_out, C = e_even.shape
    neg = jnp.full((1, C), -jnp.inf, dtype=e_odd.dtype)
    prev_odd = jnp.concatenate([neg, e_odd[:L_out - 1, :]], axis=0)  # rows 2i-1
    # MaxPool1d(k=3, s=2, p=1): out[i] = max(h[2i-1], h[2i], h[2i+1])
    o_ref[...] = jnp.maximum(jnp.maximum(prev_odd, e_even), e_odd).astype(o_ref.dtype)


def distilling_layer(x, p, eps=1e-5):
    B, L, C = x.shape
    assert L % 2 == 0
    L_out = L // 2

    h, stats = pl.pallas_call(
        _distill_conv_kernel,
        out_shape=(jax.ShapeDtypeStruct((B, L, C), jnp.float32),
                   jax.ShapeDtypeStruct((B, 2, C), jnp.float32)),
        grid=(B,),
        in_specs=[pl.BlockSpec((None, L, C), lambda b: (b, 0, 0)),
                  pl.BlockSpec((C, C), lambda b: (0, 0)),
                  pl.BlockSpec((C, C), lambda b: (0, 0)),
                  pl.BlockSpec((C, C), lambda b: (0, 0)),
                  pl.BlockSpec((1, C), lambda b: (0, 0))],
        out_specs=(pl.BlockSpec((None, L, C), lambda b: (b, 0, 0)),
                   pl.BlockSpec((None, 2, C), lambda b: (b, 0, 0))),
        compiler_params=_mosaic_params(),
    )(x, p["w0_t"], p["w1_t"], p["w2_t"], p["conv_b"].reshape(1, C))

    # BatchNorm training statistics: tiny (B, 2, C) reduction stays in XLA.
    n = float(B * L)
    mean = jnp.sum(stats[:, 0, :], axis=0) / n
    var = jnp.sum(stats[:, 1, :], axis=0) / n - mean * mean   # biased (train-mode)
    inv = jax.lax.rsqrt(var + eps)
    a = (p["bn_g"] * inv).reshape(1, C)
    b = (p["bn_b"] - mean * p["bn_g"] * inv).reshape(1, C)

    # Even/odd row de-interleave done as a cheap XLA reshape/slice (robust
    # lowering; avoids in-kernel strided sublane reads).
    h2 = h.reshape(B, L_out, 2, C)
    h_even = h2[:, :, 0, :]
    h_odd = h2[:, :, 1, :]

    return pl.pallas_call(
        _distill_pool_kernel,
        out_shape=jax.ShapeDtypeStruct((B, L_out, C), x.dtype),
        grid=(B,),
        in_specs=[pl.BlockSpec((None, L_out, C), lambda b: (b, 0, 0)),
                  pl.BlockSpec((None, L_out, C), lambda b: (b, 0, 0)),
                  pl.BlockSpec((1, C), lambda b: (0, 0)),
                  pl.BlockSpec((1, C), lambda b: (0, 0))],
        out_specs=pl.BlockSpec((None, L_out, C), lambda b: (b, 0, 0)),
        compiler_params=_mosaic_params(),
    )(h_even, h_odd, a, b)


# ----------------------------------------------------------------------------
# ProbAttention (mask_flag=False, output_attention=False, dropout=0.0)
# ----------------------------------------------------------------------------
def prob_attention(q, k, v, rng_key, factor=5):
    # q, k, v: (B, L, H, D) -> (B, L, H*D)
    Q = jnp.transpose(q, (0, 2, 1, 3))
    K = jnp.transpose(k, (0, 2, 1, 3))
    V = jnp.transpose(v, (0, 2, 1, 3))
    B, H, L_K, D = K.shape
    L_Q = Q.shape[2]

    U_part = min(factor * int(np.ceil(np.log(L_K))), L_K)
    u = min(factor * int(np.ceil(np.log(L_Q))), L_Q)

    # TODO(synk): random key sampling / top-k query selection / scatter-back is
    # gather+top-k glue; kept in plain JAX.
    index_sample = jax.random.randint(rng_key, (L_Q, U_part), 0, L_K)
    K_sample = K[:, :, index_sample, :]                        # (B,H,L_Q,U_part,D)
    Q_K_sample = jnp.einsum("bhld,bhlsd->bhls", Q, K_sample)
    M_meas = Q_K_sample.max(axis=-1) - Q_K_sample.sum(axis=-1) / L_K
    M_top = jax.lax.top_k(M_meas, u)[1]                        # (B,H,u)
    Q_reduce = jnp.take_along_axis(Q, M_top[..., None], axis=2)

    scale = 1.0 / math.sqrt(D)
    KT = jnp.transpose(K, (0, 1, 3, 2))                        # (B,H,D,Lk)
    ctx_top = prob_attn_core(Q_reduce, KT, V, scale)           # Pallas hot path

    # initial context: mean of V broadcast over queries (mask_flag=False branch)
    context = jnp.broadcast_to(jnp.mean(V, axis=2, keepdims=True), (B, H, L_Q, D))
    b_idx = jnp.arange(B)[:, None, None]
    h_idx = jnp.arange(H)[None, :, None]
    context = context.at[b_idx, h_idx, M_top, :].set(ctx_top)
    return jnp.transpose(context, (0, 2, 1, 3)).reshape(B, L_Q, H * D)


def encoder_layer(x, p, n_heads, rng_key):
    B, L, hd = x.shape
    D = hd // n_heads
    # fused Q/K/V projection: one matmul over [Wq | Wk | Wv]
    qkv = matmul_bias(x, p["wqkv_t"], p["bqkv"])               # (B, L, 3*hd)
    q = qkv[..., :hd].reshape(B, L, n_heads, D)
    k = qkv[..., hd:2 * hd].reshape(B, L, n_heads, D)
    v = qkv[..., 2 * hd:].reshape(B, L, n_heads, D)
    attn_out = prob_attention(q, k, v, rng_key)                # dropout p=0.0
    # out-projection + residual + norm1 fused
    x1 = matmul_add_layernorm(attn_out, p["wo_t"], p["bo"], x, p["g1"], p["b1"])
    # conv1(k=1)+relu+conv2(k=1) + residual + norm2 fused
    return ffn_layernorm(x1, p["w1_t"], p["b1c"], p["w2_t"], p["b2c"],
                         p["g2"], p["b2"])


def encoder_forward(x, params, n_heads, rng_key):
    n_layers = len(params["layers"])
    keys = jax.random.split(rng_key, n_layers)
    for i in range(n_layers - 1):
        x = encoder_layer(x, params["layers"][i], n_heads, keys[i])
        x = distilling_layer(x, params["distill"][i])
    x = encoder_layer(x, params["layers"][-1], n_heads, keys[-1])
    return layernorm(x, params["norm_g"], params["norm_b"])    # final LayerNorm


# ----------------------------------------------------------------------------
# Deterministic parameter init (PyTorch-shaped, stored pre-transposed/packed)
# ----------------------------------------------------------------------------
def _dense(key, n_out, n_in):
    k1, k2 = jax.random.split(key)
    bound = 1.0 / math.sqrt(n_in)
    w = jax.random.uniform(k1, (n_out, n_in), jnp.float32, -bound, bound)
    b = jax.random.uniform(k2, (n_out,), jnp.float32, -bound, bound)
    return w, b


def init_params(key, hidden, inter, n_layers, n_heads):
    params = {"layers": [], "distill": []}
    for _ in range(n_layers):
        key, *ks = jax.random.split(key, 7)
        wq, bq = _dense(ks[0], hidden, hidden)
        wk, bk = _dense(ks[1], hidden, hidden)
        wv, bv = _dense(ks[2], hidden, hidden)
        wo, bo = _dense(ks[3], hidden, hidden)
        w1, b1c = _dense(ks[4], inter, hidden)   # Conv1d(hidden, inter, k=1)
        w2, b2c = _dense(ks[5], hidden, inter)   # Conv1d(inter, hidden, k=1)
        params["layers"].append({
            # weights stored pre-transposed (K, N); QKV pre-fused along N
            "wqkv_t": jnp.concatenate([wq.T, wk.T, wv.T], axis=1),
            "bqkv": jnp.concatenate([bq, bk, bv]),
            "wo_t": wo.T, "bo": bo,
            "w1_t": w1.T, "b1c": b1c, "w2_t": w2.T, "b2c": b2c,
            "g1": jnp.ones((hidden,), jnp.float32),
            "b1": jnp.zeros((hidden,), jnp.float32),
            "g2": jnp.ones((hidden,), jnp.float32),
            "b2": jnp.zeros((hidden,), jnp.float32),
        })
    for _ in range(n_layers - 1):
        key, k1, k2 = jax.random.split(key, 3)
        bound = 1.0 / math.sqrt(hidden * 3)
        cw = jax.random.uniform(k1, (hidden, hidden, 3), jnp.float32, -bound, bound)
        cb = jax.random.uniform(k2, (hidden,), jnp.float32, -bound, bound)
        params["distill"].append({
            # pre-transposed conv taps: tap k maps x[t-1+k] -> out channels
            "w0_t": cw[:, :, 0].T, "w1_t": cw[:, :, 1].T, "w2_t": cw[:, :, 2].T,
            "conv_b": cb,
            "bn_g": jnp.ones((hidden,), jnp.float32),
            "bn_b": jnp.zeros((hidden,), jnp.float32),
        })
    params["norm_g"] = jnp.ones((hidden,), jnp.float32)
    params["norm_b"] = jnp.zeros((hidden,), jnp.float32)
    return params


if __name__ == "__main__":
    hidden, inter, n_layers, n_heads = 32, 64, 2, 4
    B, L = 2, 8
    key = jax.random.PRNGKey(0)
    k_x, k_p, k_attn = jax.random.split(key, 3)

    x = jax.random.normal(k_x, (B, L, hidden), jnp.float32)
    params = init_params(k_p, hidden, inter, n_layers, n_heads)

    fwd = jax.jit(lambda xx, pp, kk: encoder_forward(xx, pp, n_heads, kk))
    out = fwd(x, params, k_attn)
    out = jax.block_until_ready(out)

    assert out.shape == (B, L // 2, hidden), out.shape
    assert bool(jnp.all(jnp.isfinite(out)))
    print("KERNEL_OK")
</pallas_src>

<mosaic_0001>
module attributes {stable_mosaic.version = 11 : i64} {
  func.func @_matmul_bias_kernel(%arg0: i32, %arg1: memref<16x32xf32, #tpu.memory_space<vmem>>, %arg2: memref<32x96xf32, #tpu.memory_space<vmem>>, %arg3: memref<1x96xf32, #tpu.memory_space<vmem>>, %arg4: memref<16x96xf32, #tpu.memory_space<vmem>>) attributes {dimension_semantics = [#tpu.dimension_semantics<parallel>], iteration_bounds = array<i64: 1>, scalar_prefetch = 0 : i64, scratch_operands = 0 : i64, tpu.core_type = #tpu.core_type<tc>, window_params = [{transform_indices = @transform_0, window_bounds = array<i64: 16, 32>}, {pipeline_mode = #tpu.pipeline_mode<synchronous>, transform_indices = @transform_1, window_bounds = array<i64: 32, 96>}, {pipeline_mode = #tpu.pipeline_mode<synchronous>, transform_indices = @transform_2, window_bounds = array<i64: 1, 96>}, {transform_indices = @transform_3, window_bounds = array<i64: 16, 96>}]} {
    %c0 = arith.constant 0 : index
    %c0_0 = arith.constant 0 : index
    %0 = vector.load %arg1[%c0, %c0_0] : memref<16x32xf32, #tpu.memory_space<vmem>>, vector<16x32xf32>
    %c0_1 = arith.constant 0 : index
    %c0_2 = arith.constant 0 : index
    %1 = vector.load %arg2[%c0_1, %c0_2] : memref<32x96xf32, #tpu.memory_space<vmem>>, vector<32x96xf32>
    %cst = arith.constant dense<0.000000e+00> : vector<16x96xf32>
    %2 = tpu.matmul %0, %1, %cst {dimension_numbers = #tpu.dot_dimension_numbers<[1], [0], [0], [1], [0, 0, 1, 1], [], []>} : vector<16x32xf32>, vector<32x96xf32>, vector<16x96xf32> -> vector<16x96xf32>
    %c0_3 = arith.constant 0 : index
    %c0_4 = arith.constant 0 : index
    %3 = vector.load %arg3[%c0_3, %c0_4] : memref<1x96xf32, #tpu.memory_space<vmem>>, vector<1x96xf32>
    %4 = vector.broadcast %3 : vector<1x96xf32> to vector<16x96xf32>
    %5 = arith.addf %2, %4 : vector<16x96xf32>
    %c0_5 = arith.constant 0 : index
    %c0_6 = arith.constant 0 : index
    %6 = vector.load %arg4[%c0_5, %c0_6] : memref<16x96xf32, #tpu.memory_space<vmem>>, vector<16x96xf32>
    tpu.vector_store %arg4[%c0_5, %c0_6], %5 {strides = array<i32>} : memref<16x96xf32, #tpu.memory_space<vmem>>, vector<16x96xf32>,
    return
  }
  func.func @transform_0(%arg0: i32) -> (i32, i32) {
    %c0_i32 = arith.constant 0 : i32
    %c0_i32_0 = arith.constant 0 : i32
    return %arg0, %c0_i32 : i32, i32
  }
  func.func @transform_1(%arg0: i32) -> (i32, i32) {
    %c0_i32 = arith.constant 0 : i32
    %c0_i32_0 = arith.constant 0 : i32
    %c0_i32_1 = arith.constant 0 : i32
    return %c0_i32, %c0_i32_0 : i32, i32
  }
  func.func @transform_2(%arg0: i32) -> (i32, i32) {
    %c0_i32 = arith.constant 0 : i32
    %c0_i32_0 = arith.constant 0 : i32
    %c0_i32_1 = arith.constant 0 : i32
    return %c0_i32, %c0_i32_0 : i32, i32
  }
  func.func @transform_3(%arg0: i32) -> (i32, i32) {
    %c0_i32 = arith.constant 0 : i32
    %c0_i32_0 = arith.constant 0 : i32
    return %arg0, %c0_i32 : i32, i32
  }
}

module attributes {stable_mosaic.version = 11 : i64} {
  func.func @_prob_attn_kernel(%arg0: i32, %arg1: memref<1x4x8x8xf32, #tpu.memory_space<vmem>>, %arg2: memref<1x4x8x8xf32, #tpu.memory_space<vmem>>, %arg3: memref<1x4x8x8xf32, #tpu.memory_space<vmem>>, %arg4: memref<1x4x8x8xf32, #tpu.memory_space<vmem>>) attributes {dimension_semantics = [#tpu.dimension_semantics<parallel>], iteration_bounds = array<i64: 2>, scalar_prefetch = 0 : i64, scratch_operands = 0 : i64, tpu.core_type = #tpu.core_type<tc>, window_params = [{transform_indices = @transform_0, window_bounds = array<i64: 1, 4, 8, 8>}, {transform_indices = @transform_1, window_bounds = array<i64: 1, 4, 8, 8>}, {transform_indices = @transform_2, window_bounds = array<i64: 1, 4, 8, 8>}, {transform_indices = @transform_3, window_bounds = array<i64: 1, 4, 8, 8>}]} {
    %c0 = arith.constant 0 : index
    %c0_0 = arith.constant 0 : index
    %c0_1 = arith.constant 0 : index
    %c0_2 = arith.constant 0 : index
    %0 = vector.load %arg1[%c0, %c0_0, %c0_1, %c0_2] : memref<1x4x8x8xf32, #tpu.memory_space<vmem>>, vector<1x4x8x8xf32>
    %1 = vector.shape_cast %0 : vector<1x4x8x8xf32> to vector<4x8x8xf32>
    %c0_3 = arith.constant 0 : index
    %c0_4 = arith.constant 0 : index
    %c0_5 = arith.constant 0 : index
    %c0_6 = arith.constant 0 : index
    %2 = vector.load %arg2[%c0_3, %c0_4, %c0_5, %c0_6] : memref<1x4x8x8xf32, #tpu.memory_space<vmem>>, vector<1x4x8x8xf32>
    %3 = vector.shape_cast %2 : vector<1x4x8x8xf32> to vector<4x8x8xf32>
    "tpu.trace_start"() <{level = 10 : i32, message = "hud,hdk->huk"}> : () -> ()
    %cst = arith.constant dense<0.000000e+00> : vector<4x8x8xf32>
    %4 = tpu.matmul %1, %3, %cst {dimension_numbers = #tpu.dot_dimension_numbers<[2], [1], [1], [2], [0, 0, 0, 1, 1, 2], [0], [0]>} : vector<4x8x8xf32>, vector<4x8x8xf32>, vector<4x8x8xf32> -> vector<4x8x8xf32>
    "tpu.trace_stop"() : () -> ()
    %cst_7 = arith.constant 0.353553385 : f32
    %5 = vector.broadcast %cst_7 : f32 to vector<4x8x8xf32>
    %6 = arith.mulf %4, %5 : vector<4x8x8xf32>
    %cst_8 = arith.constant dense<0xFF800000> : vector<4x8xf32>
    %7 = vector.multi_reduction <maximumf>, %6, %cst_8 [2] : vector<4x8x8xf32> to vector<4x8xf32>
    %8 = vector.shape_cast %7 : vector<4x8xf32> to vector<4x8x1xf32>
    %9 = vector.broadcast %8 : vector<4x8x1xf32> to vector<4x8x8xf32>
    %10 = arith.subf %6, %9 : vector<4x8x8xf32>
    %11 = math.exp %10 : vector<4x8x8xf32>
    %cst_9 = arith.constant dense<0.000000e+00> : vector<4x8xf32>
    %12 = vector.multi_reduction <add>, %11, %cst_9 [2] : vector<4x8x8xf32> to vector<4x8xf32>
    %13 = vector.shape_cast %12 : vector<4x8xf32> to vector<4x8x1xf32>
    %14 = tpu.reciprocal %13 {approx = true} : vector<4x8x1xf32> -> vector<4x8x1xf32>
    %15 = vector.broadcast %14 : vector<4x8x1xf32> to vector<4x8x8xf32>
    %16 = arith.mulf %11, %15 : vector<4x8x8xf32>
    %c0_10 = arith.constant 0 : index
    %c0_11 = arith.constant 0 : index
    %c0_12 = arith.constant 0 : index
    %c0_13 = arith.constant 0 : index
    %17 = vector.load %arg3[%c0_10, %c0_11, %c0_12, %c0_13] : memref<1x4x8x8xf32, #tpu.memory_space<vmem>>, vector<1x4x8x8xf32>
    %18 = vector.shape_cast %17 : vector<1x4x8x8xf32> to vector<4x8x8xf32>
    "tpu.trace_start"() <{level = 10 : i32, message = "huk,hkd->hud"}> : () -> ()
    %cst_14 = arith.constant dense<0.000000e+00> : vector<4x8x8xf32>
    %19 = tpu.matmul %16, %18, %cst_14 {dimension_numbers = #tpu.dot_dimension_numbers<[2], [1], [1], [2], [0, 0, 0, 1, 1, 2], [0], [0]>} : vector<4x8x8xf32>, vector<4x8x8xf32>, vector<4x8x8xf32> -> vector<4x8x8xf32>
    "tpu.trace_stop"() : () -> ()
    %c0_15 = arith.constant 0 : index
    %c0_16 = arith.constant 0 : index
    %c0_17 = arith.constant 0 : index
    %c0_18 = arith.constant 0 : index
    %20 = vector.load %arg4[%c0_15, %c0_16, %c0_17, %c0_18] : memref<1x4x8x8xf32, #tpu.memory_space<vmem>>, vector<1x4x8x8xf32>
    %21 = vector.shape_cast %20 : vector<1x4x8x8xf32> to vector<4x8x8xf32>
    %22 = vector.shape_cast %19 : vector<4x8x8xf32> to vector<1x4x8x8xf32>
    tpu.vector_store %arg4[%c0_15, %c0_16, %c0_17, %c0_18], %22 {strides = array<i32>} : memref<1x4x8x8xf32, #tpu.memory_space<vmem>>, vector<1x4x8x8xf32>,
    return
  }
  func.func @transform_0(%arg0: i32) -> (i32, i32, i32, i32) {
    %c0_i32 = arith.constant 0 : i32
    %c0_i32_0 = arith.constant 0 : i32
    %c0_i32_1 = arith.constant 0 : i32
    %c0_i32_2 = arith.constant 0 : i32
    return %arg0, %c0_i32, %c0_i32_0, %c0_i32_1 : i32, i32, i32, i32
  }
  func.func @transform_1(%arg0: i32) -> (i32, i32, i32, i32) {
    %c0_i32 = arith.constant 0 : i32
    %c0_i32_0 = arith.constant 0 : i32
    %c0_i32_1 = arith.constant 0 : i32
    %c0_i32_2 = arith.constant 0 : i32
    return %arg0, %c0_i32, %c0_i32_0, %c0_i32_1 : i32, i32, i32, i32
  }
  func.func @transform_2(%arg0: i32) -> (i32, i32, i32, i32) {
    %c0_i32 = arith.constant 0 : i32
    %c0_i32_0 = arith.constant 0 : i32
    %c0_i32_1 = arith.constant 0 : i32
    %c0_i32_2 = arith.constant 0 : i32
    return %arg0, %c0_i32, %c0_i32_0, %c0_i32_1 : i32, i32, i32, i32
  }
  func.func @transform_3(%arg0: i32) -> (i32, i32, i32, i32) {
    %c0_i32 = arith.constant 0 : i32
    %c0_i32_0 = arith.constant 0 : i32
    %c0_i32_1 = arith.constant 0 : i32
    %c0_i32_2 = arith.constant 0 : i32
    return %arg0, %c0_i32, %c0_i32_0, %c0_i32_1 : i32, i32, i32, i32
  }
}

module attributes {stable_mosaic.version = 11 : i64} {
  func.func @_matmul_add_ln_kernel(%arg0: i32, %arg1: memref<16x32xf32, #tpu.memory_space<vmem>>, %arg2: memref<32x32xf32, #tpu.memory_space<vmem>>, %arg3: memref<1x32xf32, #tpu.memory_space<vmem>>, %arg4: memref<16x32xf32, #tpu.memory_space<vmem>>, %arg5: memref<1x32xf32, #tpu.memory_space<vmem>>, %arg6: memref<1x32xf32, #tpu.memory_space<vmem>>, %arg7: memref<16x32xf32, #tpu.memory_space<vmem>>) attributes {dimension_semantics = [#tpu.dimension_semantics<parallel>], iteration_bounds = array<i64: 1>, scalar_prefetch = 0 : i64, scratch_operands = 0 : i64, tpu.core_type = #tpu.core_type<tc>, window_params = [{transform_indices = @transform_0, window_bounds = array<i64: 16, 32>}, {pipeline_mode = #tpu.pipeline_mode<synchronous>, transform_indices = @transform_1, window_bounds = array<i64: 32, 32>}, {pipeline_mode = #tpu.pipeline_mode<synchronous>, transform_indices = @transform_2, window_bounds = array<i64: 1, 32>}, {transform_indices = @transform_3, window_bounds = array<i64: 16, 32>}, {pipeline_mode = #tpu.pipeline_mode<synchronous>, transform_indices = @transform_4, window_bounds = array<i64: 1, 32>}, {pipeline_mode = #tpu.pipeline_mode<synchronous>, transform_indices = @transform_5, window_bounds = array<i64: 1, 32>}, {transform_indices = @transform_6, window_bounds = array<i64: 16, 32>}]} {
    %c0 = arith.constant 0 : index
    %c0_0 = arith.constant 0 : index
    %0 = vector.load %arg1[%c0, %c0_0] : memref<16x32xf32, #tpu.memory_space<vmem>>, vector<16x32xf32>
    %c0_1 = arith.constant 0 : index
    %c0_2 = arith.constant 0 : index
    %1 = vector.load %arg2[%c0_1, %c0_2] : memref<32x32xf32, #tpu.memory_space<vmem>>, vector<32x32xf32>
    %cst = arith.constant dense<0.000000e+00> : vector<16x32xf32>
    %2 = tpu.matmul %0, %1, %cst {dimension_numbers = #tpu.dot_dimension_numbers<[1], [0], [0], [1], [0, 0, 1, 1], [], []>} : vector<16x32xf32>, vector<32x32xf32>, vector<16x32xf32> -> vector<16x32xf32>
    %c0_3 = arith.constant 0 : index
    %c0_4 = arith.constant 0 : index
    %3 = vector.load %arg3[%c0_3, %c0_4] : memref<1x32xf32, #tpu.memory_space<vmem>>, vector<1x32xf32>
    %4 = vector.broadcast %3 : vector<1x32xf32> to vector<16x32xf32>
    %5 = arith.addf %2, %4 : vector<16x32xf32>
    %c0_5 = arith.constant 0 : index
    %c0_6 = arith.constant 0 : index
    %6 = vector.load %arg4[%c0_5, %c0_6] : memref<16x32xf32, #tpu.memory_space<vmem>>, vector<16x32xf32>
    %7 = arith.addf %5, %6 : vector<16x32xf32>
    %cst_7 = arith.constant dense<0.000000e+00> : vector<16xf32>
    %8 = vector.multi_reduction <add>, %7, %cst_7 [1] : vector<16x32xf32> to vector<16xf32>
    %9 = vector.shape_cast %8 : vector<16xf32> to vector<16x1xf32>
    %cst_8 = arith.constant 3.200000e+01 : f32
    %10 = vector.broadcast %cst_8 : f32 to vector<16x1xf32>
    %11 = arith.divf %9, %10 : vector<16x1xf32>
    %12 = vector.broadcast %11 : vector<16x1xf32> to vector<16x32xf32>
    %13 = arith.subf %7, %12 : vector<16x32xf32>
    %14 = arith.mulf %13, %13 : vector<16x32xf32>
    %cst_9 = arith.constant dense<0.000000e+00> : vector<16xf32>
    %15 = vector.multi_reduction <add>, %14, %cst_9 [1] : vector<16x32xf32> to vector<16xf32>
    %16 = vector.shape_cast %15 : vector<16xf32> to vector<16x1xf32>
    %cst_10 = arith.constant 3.200000e+01 : f32
    %17 = vector.broadcast %cst_10 : f32 to vector<16x1xf32>
    %18 = arith.divf %16, %17 : vector<16x1xf32>
    %cst_11 = arith.constant 9.99999974E-6 : f32
    %19 = vector.broadcast %cst_11 : f32 to vector<16x1xf32>
    %20 = arith.addf %18, %19 : vector<16x1xf32>
    %21 = math.rsqrt %20 : vector<16x1xf32>
    %22 = vector.broadcast %21 : vector<16x1xf32> to vector<16x32xf32>
    %23 = arith.mulf %13, %22 : vector<16x32xf32>
    %c0_12 = arith.constant 0 : index
    %c0_13 = arith.constant 0 : index
    %24 = vector.load %arg5[%c0_12, %c0_13] : memref<1x32xf32, #tpu.memory_space<vmem>>, vector<1x32xf32>
    %25 = vector.broadcast %24 : vector<1x32xf32> to vector<16x32xf32>
    %26 = arith.mulf %23, %25 : vector<16x32xf32>
    %c0_14 = arith.constant 0 : index
    %c0_15 = arith.constant 0 : index
    %27 = vector.load %arg6[%c0_14, %c0_15] : memref<1x32xf32, #tpu.memory_space<vmem>>, vector<1x32xf32>
    %28 = vector.broadcast %27 : vector<1x32xf32> to vector<16x32xf32>
    %29 = arith.addf %26, %28 : vector<16x32xf32>
    %c0_16 = arith.constant 0 : index
    %c0_17 = arith.constant 0 : index
    %30 = vector.load %arg7[%c0_16, %c0_17] : memref<16x32xf32, #tpu.memory_space<vmem>>, vector<16x32xf32>
    tpu.vector_store %arg7[%c0_16, %c0_17], %29 {strides = array<i32>} : memref<16x32xf32, #tpu.memory_space<vmem>>, vector<16x32xf32>,
    return
  }
  func.func @transform_0(%arg0: i32) -> (i32, i32) {
    %c0_i32 = arith.constant 0 : i32
    %c0_i32_0 = arith.constant 0 : i32
    return %arg0, %c0_i32 : i32, i32
  }
  func.func @transform_1(%arg0: i32) -> (i32, i32) {
    %c0_i32 = arith.constant 0 : i32
    %c0_i32_0 = arith.constant 0 : i32
    %c0_i32_1 = arith.constant 0 : i32
    return %c0_i32, %c0_i32_0 : i32, i32
  }
  func.func @transform_2(%arg0: i32) -> (i32, i32) {
    %c0_i32 = arith.constant 0 : i32
    %c0_i32_0 = arith.constant 0 : i32
    %c0_i32_1 = arith.constant 0 : i32
    return %c0_i32, %c0_i32_0 : i32, i32
  }
  func.func @transform_3(%arg0: i32) -> (i32, i32) {
    %c0_i32 = arith.constant 0 : i32
    %c0_i32_0 = arith.constant 0 : i32
    return %arg0, %c0_i32 : i32, i32
  }
  func.func @transform_4(%arg0: i32) -> (i32, i32) {
    %c0_i32 = arith.constant 0 : i32
    %c0_i32_0 = arith.constant 0 : i32
    %c0_i32_1 = arith.constant 0 : i32
    return %c0_i32, %c0_i32_0 : i32, i32
  }
  func.func @transform_5(%arg0: i32) -> (i32, i32) {
    %c0_i32 = arith.constant 0 : i32
    %c0_i32_0 = arith.constant 0 : i32
    %c0_i32_1 = arith.constant 0 : i32
    return %c0_i32, %c0_i32_0 : i32, i32
  }
  func.func @transform_6(%arg0: i32) -> (i32, i32) {
    %c0_i32 = arith.constant 0 : i32
    %c0_i32_0 = arith.constant 0 : i32
    return %arg0, %c0_i32 : i32, i32
  }
}

module attributes {stable_mosaic.version = 11 : i64} {
  func.func @_distill_conv_kernel(%arg0: i32, %arg1: memref<1x8x32xf32, #tpu.memory_space<vmem>>, %arg2: memref<32x32xf32, #tpu.memory_space<vmem>>, %arg3: memref<32x32xf32, #tpu.memory_space<vmem>>, %arg4: memref<32x32xf32, #tpu.memory_space<vmem>>, %arg5: memref<1x32xf32, #tpu.memory_space<vmem>>, %arg6: memref<1x8x32xf32, #tpu.memory_space<vmem>>, %arg7: memref<1x2x32xf32, #tpu.memory_space<vmem>>) attributes {dimension_semantics = [#tpu.dimension_semantics<parallel>], iteration_bounds = array<i64: 2>, scalar_prefetch = 0 : i64, scratch_operands = 0 : i64, tpu.core_type = #tpu.core_type<tc>, window_params = [{transform_indices = @transform_0, window_bounds = array<i64: 1, 8, 32>}, {pipeline_mode = #tpu.pipeline_mode<synchronous>, transform_indices = @transform_1, window_bounds = array<i64: 32, 32>}, {pipeline_mode = #tpu.pipeline_mode<synchronous>, transform_indices = @transform_2, window_bounds = array<i64: 32, 32>}, {pipeline_mode = #tpu.pipeline_mode<synchronous>, transform_indices = @transform_3, window_bounds = array<i64: 32, 32>}, {pipeline_mode = #tpu.pipeline_mode<synchronous>, transform_indices = @transform_4, window_bounds = array<i64: 1, 32>}, {transform_indices = @transform_5, window_bounds = array<i64: 1, 8, 32>}, {transform_indices = @transform_6, window_bounds = array<i64: 1, 2, 32>}]} {
    %c0 = arith.constant 0 : index
    %c0_0 = arith.constant 0 : index
    %c0_1 = arith.constant 0 : index
    %0 = vector.load %arg1[%c0, %c0_0, %c0_1] : memref<1x8x32xf32, #tpu.memory_space<vmem>>, vector<1x8x32xf32>
    %1 = vector.shape_cast %0 : vector<1x8x32xf32> to vector<8x32xf32>
    %2 = vector.extract_strided_slice %1 {offsets = [7, 0], sizes = [1, 32], strides = [1, 1]} : vector<8x32xf32> to vector<1x32xf32>
    %3 = vector.extract_strided_slice %1 {offsets = [0, 0], sizes = [7, 32], strides = [1, 1]} : vector<8x32xf32> to vector<7x32xf32>
    %4 = tpu.concatenate %2, %3 in 0 : vector<1x32xf32>, vector<7x32xf32> -> vector<8x32xf32>
    %5 = vector.extract_strided_slice %1 {offsets = [1, 0], sizes = [7, 32], strides = [1, 1]} : vector<8x32xf32> to vector<7x32xf32>
    %6 = vector.extract_strided_slice %1 {offsets = [0, 0], sizes = [1, 32], strides = [1, 1]} : vector<8x32xf32> to vector<1x32xf32>
    %7 = tpu.concatenate %5, %6 in 0 : vector<7x32xf32>, vector<1x32xf32> -> vector<8x32xf32>
    %c0_2 = arith.constant 0 : index
    %c0_3 = arith.constant 0 : index
    %8 = vector.load %arg2[%c0_2, %c0_3] : memref<32x32xf32, #tpu.memory_space<vmem>>, vector<32x32xf32>
    %cst = arith.constant dense<0.000000e+00> : vector<8x32xf32>
    %9 = tpu.matmul %4, %8, %cst {dimension_numbers = #tpu.dot_dimension_numbers<[1], [0], [0], [1], [0, 0, 1, 1], [], []>} : vector<8x32xf32>, vector<32x32xf32>, vector<8x32xf32> -> vector<8x32xf32>
    %c0_4 = arith.constant 0 : index
    %c0_5 = arith.constant 0 : index
    %10 = vector.load %arg3[%c0_4, %c0_5] : memref<32x32xf32, #tpu.memory_space<vmem>>, vector<32x32xf32>
    %cst_6 = arith.constant dense<0.000000e+00> : vector<8x32xf32>
    %11 = tpu.matmul %1, %10, %cst_6 {dimension_numbers = #tpu.dot_dimension_numbers<[1], [0], [0], [1], [0, 0, 1, 1], [], []>} : vector<8x32xf32>, vector<32x32xf32>, vector<8x32xf32> -> vector<8x32xf32>
    %12 = arith.addf %9, %11 : vector<8x32xf32>
    %c0_7 = arith.constant 0 : index
    %c0_8 = arith.constant 0 : index
    %13 = vector.load %arg4[%c0_7, %c0_8] : memref<32x32xf32, #tpu.memory_space<vmem>>, vector<32x32xf32>
    %cst_9 = arith.constant dense<0.000000e+00> : vector<8x32xf32>
    %14 = tpu.matmul %7, %13, %cst_9 {dimension_numbers = #tpu.dot_dimension_numbers<[1], [0], [0], [1], [0, 0, 1, 1], [], []>} : vector<8x32xf32>, vector<32x32xf32>, vector<8x32xf32> -> vector<8x32xf32>
    %15 = arith.addf %12, %14 : vector<8x32xf32>
    %c0_10 = arith.constant 0 : index
    %c0_11 = arith.constant 0 : index
    %16 = vector.load %arg5[%c0_10, %c0_11] : memref<1x32xf32, #tpu.memory_space<vmem>>, vector<1x32xf32>
    %17 = vector.broadcast %16 : vector<1x32xf32> to vector<8x32xf32>
    %18 = arith.addf %15, %17 : vector<8x32xf32>
    %c0_12 = arith.constant 0 : index
    %c0_13 = arith.constant 0 : index
    %c0_14 = arith.constant 0 : index
    %19 = vector.load %arg6[%c0_12, %c0_13, %c0_14] : memref<1x8x32xf32, #tpu.memory_space<vmem>>, vector<1x8x32xf32>
    %20 = vector.shape_cast %19 : vector<1x8x32xf32> to vector<8x32xf32>
    %21 = vector.shape_cast %18 : vector<8x32xf32> to vector<1x8x32xf32>
    tpu.vector_store %arg6[%c0_12, %c0_13, %c0_14], %21 {strides = array<i32>} : memref<1x8x32xf32, #tpu.memory_space<vmem>>, vector<1x8x32xf32>,
    %cst_15 = arith.constant dense<0.000000e+00> : vector<32xf32>
    %22 = vector.multi_reduction <add>, %18, %cst_15 [0] : vector<8x32xf32> to vector<32xf32>
    %23 = vector.shape_cast %22 : vector<32xf32> to vector<1x32xf32>
    %24 = arith.mulf %18, %18 : vector<8x32xf32>
    %cst_16 = arith.constant dense<0.000000e+00> : vector<32xf32>
    %25 = vector.multi_reduction <add>, %24, %cst_16 [0] : vector<8x32xf32> to vector<32xf32>
    %26 = vector.shape_cast %25 : vector<32xf32> to vector<1x32xf32>
    %27 = tpu.concatenate %23, %26 in 0 : vector<1x32xf32>, vector<1x32xf32> -> vector<2x32xf32>
    %c0_17 = arith.constant 0 : index
    %c0_18 = arith.constant 0 : index
    %c0_19 = arith.constant 0 : index
    %28 = vector.load %arg7[%c0_17, %c0_18, %c0_19] : memref<1x2x32xf32, #tpu.memory_space<vmem>>, vector<1x2x32xf32>
    %29 = vector.shape_cast %28 : vector<1x2x32xf32> to vector<2x32xf32>
    %30 = vector.shape_cast %27 : vector<2x32xf32> to vector<1x2x32xf32>
    tpu.vector_store %arg7[%c0_17, %c0_18, %c0_19], %30 {strides = array<i32>} : memref<1x2x32xf32, #tpu.memory_space<vmem>>, vector<1x2x32xf32>,
    return
  }
  func.func @transform_0(%arg0: i32) -> (i32, i32, i32) {
    %c0_i32 = arith.constant 0 : i32
    %c0_i32_0 = arith.constant 0 : i32
    %c0_i32_1 = arith.constant 0 : i32
    return %arg0, %c0_i32, %c0_i32_0 : i32, i32, i32
  }
  func.func @transform_1(%arg0: i32) -> (i32, i32) {
    %c0_i32 = arith.constant 0 : i32
    %c0_i32_0 = arith.constant 0 : i32
    %c0_i32_1 = arith.constant 0 : i32
    return %c0_i32, %c0_i32_0 : i32, i32
  }
  func.func @transform_2(%arg0: i32) -> (i32, i32) {
    %c0_i32 = arith.constant 0 : i32
    %c0_i32_0 = arith.constant 0 : i32
    %c0_i32_1 = arith.constant 0 : i32
    return %c0_i32, %c0_i32_0 : i32, i32
  }
  func.func @transform_3(%arg0: i32) -> (i32, i32) {
    %c0_i32 = arith.constant 0 : i32
    %c0_i32_0 = arith.constant 0 : i32
    %c0_i32_1 = arith.constant 0 : i32
    return %c0_i32, %c0_i32_0 : i32, i32
  }
  func.func @transform_4(%arg0: i32) -> (i32, i32) {
    %c0_i32 = arith.constant 0 : i32
    %c0_i32_0 = arith.constant 0 : i32
    %c0_i32_1 = arith.constant 0 : i32
    return %c0_i32, %c0_i32_0 : i32, i32
  }
  func.func @transform_5(%arg0: i32) -> (i32, i32, i32) {
    %c0_i32 = arith.constant 0 : i32
    %c0_i32_0 = arith.constant 0 : i32
    %c0_i32_1 = arith.constant 0 : i32
    return %arg0, %c0_i32, %c0_i32_0 : i32, i32, i32
  }
  func.func @transform_6(%arg0: i32) -> (i32, i32, i32) {
    %c0_i32 = arith.constant 0 : i32
    %c0_i32_0 = arith.constant 0 : i32
    %c0_i32_1 = arith.constant 0 : i32
    return %arg0, %c0_i32, %c0_i32_0 : i32, i32, i32
  }
}

module attributes {stable_mosaic.version = 11 : i64} {
  func.func @_ffn_ln_kernel(%arg0: i32, %arg1: memref<16x32xf32, #tpu.memory_space<vmem>>, %arg2: memref<32x64xf32, #tpu.memory_space<vmem>>, %arg3: memref<1x64xf32, #tpu.memory_space<vmem>>, %arg4: memref<64x32xf32, #tpu.memory_space<vmem>>, %arg5: memref<1x32xf32, #tpu.memory_space<vmem>>, %arg6: memref<1x32xf32, #tpu.memory_space<vmem>>, %arg7: memref<1x32xf32, #tpu.memory_space<vmem>>, %arg8: memref<16x32xf32, #tpu.memory_space<vmem>>) attributes {dimension_semantics = [#tpu.dimension_semantics<parallel>], iteration_bounds = array<i64: 1>, scalar_prefetch = 0 : i64, scratch_operands = 0 : i64, tpu.core_type = #tpu.core_type<tc>, window_params = [{transform_indices = @transform_0, window_bounds = array<i64: 16, 32>}, {pipeline_mode = #tpu.pipeline_mode<synchronous>, transform_indices = @transform_1, window_bounds = array<i64: 32, 64>}, {pipeline_mode = #tpu.pipeline_mode<synchronous>, transform_indices = @transform_2, window_bounds = array<i64: 1, 64>}, {pipeline_mode = #tpu.pipeline_mode<synchronous>, transform_indices = @transform_3, window_bounds = array<i64: 64, 32>}, {pipeline_mode = #tpu.pipeline_mode<synchronous>, transform_indices = @transform_4, window_bounds = array<i64: 1, 32>}, {pipeline_mode = #tpu.pipeline_mode<synchronous>, transform_indices = @transform_5, window_bounds = array<i64: 1, 32>}, {pipeline_mode = #tpu.pipeline_mode<synchronous>, transform_indices = @transform_6, window_bounds = array<i64: 1, 32>}, {transform_indices = @transform_7, window_bounds = array<i64: 16, 32>}]} {
    %c0 = arith.constant 0 : index
    %c0_0 = arith.constant 0 : index
    %0 = vector.load %arg1[%c0, %c0_0] : memref<16x32xf32, #tpu.memory_space<vmem>>, vector<16x32xf32>
    %c0_1 = arith.constant 0 : index
    %c0_2 = arith.constant 0 : index
    %1 = vector.load %arg2[%c0_1, %c0_2] : memref<32x64xf32, #tpu.memory_space<vmem>>, vector<32x64xf32>
    %cst = arith.constant dense<0.000000e+00> : vector<16x64xf32>
    %2 = tpu.matmul %0, %1, %cst {dimension_numbers = #tpu.dot_dimension_numbers<[1], [0], [0], [1], [0, 0, 1, 1], [], []>} : vector<16x32xf32>, vector<32x64xf32>, vector<16x64xf32> -> vector<16x64xf32>
    %c0_3 = arith.constant 0 : index
    %c0_4 = arith.constant 0 : index
    %3 = vector.load %arg3[%c0_3, %c0_4] : memref<1x64xf32, #tpu.memory_space<vmem>>, vector<1x64xf32>
    %4 = vector.broadcast %3 : vector<1x64xf32> to vector<16x64xf32>
    %5 = arith.addf %2, %4 : vector<16x64xf32>
    %cst_5 = arith.constant 0.000000e+00 : f32
    %6 = vector.broadcast %cst_5 : f32 to vector<16x64xf32>
    %7 = arith.maximumf %5, %6 : vector<16x64xf32>
    %c0_6 = arith.constant 0 : index
    %c0_7 = arith.constant 0 : index
    %8 = vector.load %arg4[%c0_6, %c0_7] : memref<64x32xf32, #tpu.memory_space<vmem>>, vector<64x32xf32>
    %cst_8 = arith.constant dense<0.000000e+00> : vector<16x32xf32>
    %9 = tpu.matmul %7, %8, %cst_8 {dimension_numbers = #tpu.dot_dimension_numbers<[1], [0], [0], [1], [0, 0, 1, 1], [], []>} : vector<16x64xf32>, vector<64x32xf32>, vector<16x32xf32> -> vector<16x32xf32>
    %c0_9 = arith.constant 0 : index
    %c0_10 = arith.constant 0 : index
    %10 = vector.load %arg5[%c0_9, %c0_10] : memref<1x32xf32, #tpu.memory_space<vmem>>, vector<1x32xf32>
    %11 = vector.broadcast %10 : vector<1x32xf32> to vector<16x32xf32>
    %12 = arith.addf %9, %11 : vector<16x32xf32>
    %13 = arith.addf %12, %0 : vector<16x32xf32>
    %cst_11 = arith.constant dense<0.000000e+00> : vector<16xf32>
    %14 = vector.multi_reduction <add>, %13, %cst_11 [1] : vector<16x32xf32> to vector<16xf32>
    %15 = vector.shape_cast %14 : vector<16xf32> to vector<16x1xf32>
    %cst_12 = arith.constant 3.200000e+01 : f32
    %16 = vector.broadcast %cst_12 : f32 to vector<16x1xf32>
    %17 = arith.divf %15, %16 : vector<16x1xf32>
    %18 = vector.broadcast %17 : vector<16x1xf32> to vector<16x32xf32>
    %19 = arith.subf %13, %18 : vector<16x32xf32>
    %20 = arith.mulf %19, %19 : vector<16x32xf32>
    %cst_13 = arith.constant dense<0.000000e+00> : vector<16xf32>
    %21 = vector.multi_reduction <add>, %20, %cst_13 [1] : vector<16x32xf32> to vector<16xf32>
    %22 = vector.shape_cast %21 : vector<16xf32> to vector<16x1xf32>
    %cst_14 = arith.constant 3.200000e+01 : f32
    %23 = vector.broadcast %cst_14 : f32 to vector<16x1xf32>
    %24 = arith.divf %22, %23 : vector<16x1xf32>
    %cst_15 = arith.constant 9.99999974E-6 : f32
    %25 = vector.broadcast %cst_15 : f32 to vector<16x1xf32>
    %26 = arith.addf %24, %25 : vector<16x1xf32>
    %27 = math.rsqrt %26 : vector<16x1xf32>
    %28 = vector.broadcast %27 : vector<16x1xf32> to vector<16x32xf32>
    %29 = arith.mulf %19, %28 : vector<16x32xf32>
    %c0_16 = arith.constant 0 : index
    %c0_17 = arith.constant 0 : index
    %30 = vector.load %arg6[%c0_16, %c0_17] : memref<1x32xf32, #tpu.memory_space<vmem>>, vector<1x32xf32>
    %31 = vector.broadcast %30 : vector<1x32xf32> to vector<16x32xf32>
    %32 = arith.mulf %29, %31 : vector<16x32xf32>
    %c0_18 = arith.constant 0 : index
    %c0_19 = arith.constant 0 : index
    %33 = vector.load %arg7[%c0_18, %c0_19] : memref<1x32xf32, #tpu.memory_space<vmem>>, vector<1x32xf32>
    %34 = vector.broadcast %33 : vector<1x32xf32> to vector<16x32xf32>
    %35 = arith.addf %32, %34 : vector<16x32xf32>
    %c0_20 = arith.constant 0 : index
    %c0_21 = arith.constant 0 : index
    %36 = vector.load %arg8[%c0_20, %c0_21] : memref<16x32xf32, #tpu.memory_space<vmem>>, vector<16x32xf32>
    tpu.vector_store %arg8[%c0_20, %c0_21], %35 {strides = array<i32>} : memref<16x32xf32, #tpu.memory_space<vmem>>, vector<16x32xf32>,
    return
  }
  func.func @transform_0(%arg0: i32) -> (i32, i32) {
    %c0_i32 = arith.constant 0 : i32
    %c0_i32_0 = arith.constant 0 : i32
    return %arg0, %c0_i32 : i32, i32
  }
  func.func @transform_1(%arg0: i32) -> (i32, i32) {
    %c0_i32 = arith.constant 0 : i32
    %c0_i32_0 = arith.constant 0 : i32
    %c0_i32_1 = arith.constant 0 : i32
    return %c0_i32, %c0_i32_0 : i32, i32
  }
  func.func @transform_2(%arg0: i32) -> (i32, i32) {
    %c0_i32 = arith.constant 0 : i32
    %c0_i32_0 = arith.constant 0 : i32
    %c0_i32_1 = arith.constant 0 : i32
    return %c0_i32, %c0_i32_0 : i32, i32
  }
  func.func @transform_3(%arg0: i32) -> (i32, i32) {
    %c0_i32 = arith.constant 0 : i32
    %c0_i32_0 = arith.constant 0 : i32
    %c0_i32_1 = arith.constant 0 : i32
    return %c0_i32, %c0_i32_0 : i32, i32
  }
  func.func @transform_4(%arg0: i32) -> (i32, i32) {
    %c0_i32 = arith.constant 0 : i32
    %c0_i32_0 = arith.constant 0 : i32
    %c0_i32_1 = arith.constant 0 : i32
    return %c0_i32, %c0_i32_0 : i32, i32
  }
  func.func @transform_5(%arg0: i32) -> (i32, i32) {
    %c0_i32 = arith.constant 0 : i32
    %c0_i32_0 = arith.constant 0 : i32
    %c0_i32_1 = arith.constant 0 : i32
    return %c0_i32, %c0_i32_0 : i32, i32
  }
  func.func @transform_6(%arg0: i32) -> (i32, i32) {
    %c0_i32 = arith.constant 0 : i32
    %c0_i32_0 = arith.constant 0 : i32
    %c0_i32_1 = arith.constant 0 : i32
    return %c0_i32, %c0_i32_0 : i32, i32
  }
  func.func @transform_7(%arg0: i32) -> (i32, i32) {
    %c0_i32 = arith.constant 0 : i32
    %c0_i32_0 = arith.constant 0 : i32
    return %arg0, %c0_i32 : i32, i32
  }
}

module attributes {stable_mosaic.version = 11 : i64} {
  func.func @_distill_pool_kernel(%arg0: i32, %arg1: memref<1x4x32xf32, #tpu.memory_space<vmem>>, %arg2: memref<1x4x32xf32, #tpu.memory_space<vmem>>, %arg3: memref<1x32xf32, #tpu.memory_space<vmem>>, %arg4: memref<1x32xf32, #tpu.memory_space<vmem>>, %arg5: memref<1x4x32xf32, #tpu.memory_space<vmem>>) attributes {dimension_semantics = [#tpu.dimension_semantics<parallel>], iteration_bounds = array<i64: 2>, scalar_prefetch = 0 : i64, scratch_operands = 0 : i64, tpu.core_type = #tpu.core_type<tc>, window_params = [{transform_indices = @transform_0, window_bounds = array<i64: 1, 4, 32>}, {transform_indices = @transform_1, window_bounds = array<i64: 1, 4, 32>}, {pipeline_mode = #tpu.pipeline_mode<synchronous>, transform_indices = @transform_2, window_bounds = array<i64: 1, 32>}, {pipeline_mode = #tpu.pipeline_mode<synchronous>, transform_indices = @transform_3, window_bounds = array<i64: 1, 32>}, {transform_indices = @transform_4, window_bounds = array<i64: 1, 4, 32>}]} {
    %c0 = arith.constant 0 : index
    %c0_0 = arith.constant 0 : index
    %0 = vector.load %arg3[%c0, %c0_0] : memref<1x32xf32, #tpu.memory_space<vmem>>, vector<1x32xf32>
    %c0_1 = arith.constant 0 : index
    %c0_2 = arith.constant 0 : index
    %1 = vector.load %arg4[%c0_1, %c0_2] : memref<1x32xf32, #tpu.memory_space<vmem>>, vector<1x32xf32>
    %c0_3 = arith.constant 0 : index
    %c0_4 = arith.constant 0 : index
    %c0_5 = arith.constant 0 : index
    %2 = vector.load %arg1[%c0_3, %c0_4, %c0_5] : memref<1x4x32xf32, #tpu.memory_space<vmem>>, vector<1x4x32xf32>
    %3 = vector.shape_cast %2 : vector<1x4x32xf32> to vector<4x32xf32>
    %4 = vector.broadcast %0 : vector<1x32xf32> to vector<4x32xf32>
    %5 = arith.mulf %3, %4 : vector<4x32xf32>
    %6 = vector.broadcast %1 : vector<1x32xf32> to vector<4x32xf32>
    %7 = arith.addf %5, %6 : vector<4x32xf32>
    %cst = arith.constant 0.000000e+00 : f32
    %8 = vector.broadcast %cst : f32 to vector<4x32xf32>
    %9 = arith.cmpf ogt, %7, %8 : vector<4x32xf32>
    %cst_6 = arith.constant 0.000000e+00 : f32
    %10 = vector.broadcast %cst_6 : f32 to vector<4x32xf32>
    %11 = arith.minimumf %7, %10 : vector<4x32xf32>
    %12 = math.exp %11 : vector<4x32xf32>
    %cst_7 = arith.constant 1.000000e+00 : f32
    %13 = vector.broadcast %cst_7 : f32 to vector<4x32xf32>
    %14 = arith.subf %12, %13 : vector<4x32xf32>
    %15 = arith.select %9, %7, %14 : vector<4x32xi1>, vector<4x32xf32>
    %c0_8 = arith.constant 0 : index
    %c0_9 = arith.constant 0 : index
    %c0_10 = arith.constant 0 : index
    %16 = vector.load %arg2[%c0_8, %c0_9, %c0_10] : memref<1x4x32xf32, #tpu.memory_space<vmem>>, vector<1x4x32xf32>
    %17 = vector.shape_cast %16 : vector<1x4x32xf32> to vector<4x32xf32>
    %18 = vector.broadcast %0 : vector<1x32xf32> to vector<4x32xf32>
    %19 = arith.mulf %17, %18 : vector<4x32xf32>
    %20 = vector.broadcast %1 : vector<1x32xf32> to vector<4x32xf32>
    %21 = arith.addf %19, %20 : vector<4x32xf32>
    %cst_11 = arith.constant 0.000000e+00 : f32
    %22 = vector.broadcast %cst_11 : f32 to vector<4x32xf32>
    %23 = arith.cmpf ogt, %21, %22 : vector<4x32xf32>
    %cst_12 = arith.constant 0.000000e+00 : f32
    %24 = vector.broadcast %cst_12 : f32 to vector<4x32xf32>
    %25 = arith.minimumf %21, %24 : vector<4x32xf32>
    %26 = math.exp %25 : vector<4x32xf32>
    %cst_13 = arith.constant 1.000000e+00 : f32
    %27 = vector.broadcast %cst_13 : f32 to vector<4x32xf32>
    %28 = arith.subf %26, %27 : vector<4x32xf32>
    %29 = arith.select %23, %21, %28 : vector<4x32xi1>, vector<4x32xf32>
    %cst_14 = arith.constant 0xFF800000 : f32
    %30 = vector.broadcast %cst_14 : f32 to vector<1x32xf32>
    %31 = vector.extract_strided_slice %29 {offsets = [0, 0], sizes = [3, 32], strides = [1, 1]} : vector<4x32xf32> to vector<3x32xf32>
    %32 = tpu.concatenate %30, %31 in 0 : vector<1x32xf32>, vector<3x32xf32> -> vector<4x32xf32>
    %33 = arith.maximumf %32, %15 : vector<4x32xf32>
    %34 = arith.maximumf %33, %29 : vector<4x32xf32>
    %c0_15 = arith.constant 0 : index
    %c0_16 = arith.constant 0 : index
    %c0_17 = arith.constant 0 : index
    %35 = vector.load %arg5[%c0_15, %c0_16, %c0_17] : memref<1x4x32xf32, #tpu.memory_space<vmem>>, vector<1x4x32xf32>
    %36 = vector.shape_cast %35 : vector<1x4x32xf32> to vector<4x32xf32>
    %37 = vector.shape_cast %34 : vector<4x32xf32> to vector<1x4x32xf32>
    tpu.vector_store %arg5[%c0_15, %c0_16, %c0_17], %37 {strides = array<i32>} : memref<1x4x32xf32, #tpu.memory_space<vmem>>, vector<1x4x32xf32>,
    return
  }
  func.func @transform_0(%arg0: i32) -> (i32, i32, i32) {
    %c0_i32 = arith.constant 0 : i32
    %c0_i32_0 = arith.constant 0 : i32
    %c0_i32_1 = arith.constant 0 : i32
    return %arg0, %c0_i32, %c0_i32_0 : i32, i32, i32
  }
  func.func @transform_1(%arg0: i32) -> (i32, i32, i32) {
    %c0_i32 = arith.constant 0 : i32
    %c0_i32_0 = arith.constant 0 : i32
    %c0_i32_1 = arith.constant 0 : i32
    return %arg0, %c0_i32, %c0_i32_0 : i32, i32, i32
  }
  func.func @transform_2(%arg0: i32) -> (i32, i32) {
    %c0_i32 = arith.constant 0 : i32
    %c0_i32_0 = arith.constant 0 : i32
    %c0_i32_1 = arith.constant 0 : i32
    return %c0_i32, %c0_i32_0 : i32, i32
  }
  func.func @transform_3(%arg0: i32) -> (i32, i32) {
    %c0_i32 = arith.constant 0 : i32
    %c0_i32_0 = arith.constant 0 : i32
    %c0_i32_1 = arith.constant 0 : i32
    return %c0_i32, %c0_i32_0 : i32, i32
  }
  func.func @transform_4(%arg0: i32) -> (i32, i32, i32) {
    %c0_i32 = arith.constant 0 : i32
    %c0_i32_0 = arith.constant 0 : i32
    %c0_i32_1 = arith.constant 0 : i32
    return %arg0, %c0_i32, %c0_i32_0 : i32, i32, i32
  }
}

module attributes {stable_mosaic.version = 11 : i64} {
  func.func @_matmul_bias_kernel(%arg0: i32, %arg1: memref<8x32xf32, #tpu.memory_space<vmem>>, %arg2: memref<32x96xf32, #tpu.memory_space<vmem>>, %arg3: memref<1x96xf32, #tpu.memory_space<vmem>>, %arg4: memref<8x96xf32, #tpu.memory_space<vmem>>) attributes {dimension_semantics = [#tpu.dimension_semantics<parallel>], iteration_bounds = array<i64: 1>, scalar_prefetch = 0 : i64, scratch_operands = 0 : i64, tpu.core_type = #tpu.core_type<tc>, window_params = [{transform_indices = @transform_0, window_bounds = array<i64: 8, 32>}, {pipeline_mode = #tpu.pipeline_mode<synchronous>, transform_indices = @transform_1, window_bounds = array<i64: 32, 96>}, {pipeline_mode = #tpu.pipeline_mode<synchronous>, transform_indices = @transform_2, window_bounds = array<i64: 1, 96>}, {transform_indices = @transform_3, window_bounds = array<i64: 8, 96>}]} {
    %c0 = arith.constant 0 : index
    %c0_0 = arith.constant 0 : index
    %0 = vector.load %arg1[%c0, %c0_0] : memref<8x32xf32, #tpu.memory_space<vmem>>, vector<8x32xf32>
    %c0_1 = arith.constant 0 : index
    %c0_2 = arith.constant 0 : index
    %1 = vector.load %arg2[%c0_1, %c0_2] : memref<32x96xf32, #tpu.memory_space<vmem>>, vector<32x96xf32>
    %cst = arith.constant dense<0.000000e+00> : vector<8x96xf32>
    %2 = tpu.matmul %0, %1, %cst {dimension_numbers = #tpu.dot_dimension_numbers<[1], [0], [0], [1], [0, 0, 1, 1], [], []>} : vector<8x32xf32>, vector<32x96xf32>, vector<8x96xf32> -> vector<8x96xf32>
    %c0_3 = arith.constant 0 : index
    %c0_4 = arith.constant 0 : index
    %3 = vector.load %arg3[%c0_3, %c0_4] : memref<1x96xf32, #tpu.memory_space<vmem>>, vector<1x96xf32>
    %4 = vector.broadcast %3 : vector<1x96xf32> to vector<8x96xf32>
    %5 = arith.addf %2, %4 : vector<8x96xf32>
    %c0_5 = arith.constant 0 : index
    %c0_6 = arith.constant 0 : index
    %6 = vector.load %arg4[%c0_5, %c0_6] : memref<8x96xf32, #tpu.memory_space<vmem>>, vector<8x96xf32>
    tpu.vector_store %arg4[%c0_5, %c0_6], %5 {strides = array<i32>} : memref<8x96xf32, #tpu.memory_space<vmem>>, vector<8x96xf32>,
    return
  }
  func.func @transform_0(%arg0: i32) -> (i32, i32) {
    %c0_i32 = arith.constant 0 : i32
    %c0_i32_0 = arith.constant 0 : i32
    return %arg0, %c0_i32 : i32, i32
  }
  func.func @transform_1(%arg0: i32) -> (i32, i32) {
    %c0_i32 = arith.constant 0 : i32
    %c0_i32_0 = arith.constant 0 : i32
    %c0_i32_1 = arith.constant 0 : i32
    return %c0_i32, %c0_i32_0 : i32, i32
  }
  func.func @transform_2(%arg0: i32) -> (i32, i32) {
    %c0_i32 = arith.constant 0 : i32
    %c0_i32_0 = arith.constant 0 : i32
    %c0_i32_1 = arith.constant 0 : i32
    return %c0_i32, %c0_i32_0 : i32, i32
  }
  func.func @transform_3(%arg0: i32) -> (i32, i32) {
    %c0_i32 = arith.constant 0 : i32
    %c0_i32_0 = arith.constant 0 : i32
    return %arg0, %c0_i32 : i32, i32
  }
}

module attributes {stable_mosaic.version = 11 : i64} {
  func.func @_prob_attn_kernel(%arg0: i32, %arg1: memref<1x4x4x8xf32, #tpu.memory_space<vmem>>, %arg2: memref<1x4x8x4xf32, #tpu.memory_space<vmem>>, %arg3: memref<1x4x4x8xf32, #tpu.memory_space<vmem>>, %arg4: memref<1x4x4x8xf32, #tpu.memory_space<vmem>>) attributes {dimension_semantics = [#tpu.dimension_semantics<parallel>], iteration_bounds = array<i64: 2>, scalar_prefetch = 0 : i64, scratch_operands = 0 : i64, tpu.core_type = #tpu.core_type<tc>, window_params = [{transform_indices = @transform_0, window_bounds = array<i64: 1, 4, 4, 8>}, {transform_indices = @transform_1, window_bounds = array<i64: 1, 4, 8, 4>}, {transform_indices = @transform_2, window_bounds = array<i64: 1, 4, 4, 8>}, {transform_indices = @transform_3, window_bounds = array<i64: 1, 4, 4, 8>}]} {
    %c0 = arith.constant 0 : index
    %c0_0 = arith.constant 0 : index
    %c0_1 = arith.constant 0 : index
    %c0_2 = arith.constant 0 : index
    %0 = vector.load %arg1[%c0, %c0_0, %c0_1, %c0_2] : memref<1x4x4x8xf32, #tpu.memory_space<vmem>>, vector<1x4x4x8xf32>
    %1 = vector.shape_cast %0 : vector<1x4x4x8xf32> to vector<4x4x8xf32>
    %c0_3 = arith.constant 0 : index
    %c0_4 = arith.constant 0 : index
    %c0_5 = arith.constant 0 : index
    %c0_6 = arith.constant 0 : index
    %2 = vector.load %arg2[%c0_3, %c0_4, %c0_5, %c0_6] : memref<1x4x8x4xf32, #tpu.memory_space<vmem>>, vector<1x4x8x4xf32>
    %3 = vector.shape_cast %2 : vector<1x4x8x4xf32> to vector<4x8x4xf32>
    "tpu.trace_start"() <{level = 10 : i32, message = "hud,hdk->huk"}> : () -> ()
    %cst = arith.constant dense<0.000000e+00> : vector<4x4x4xf32>
    %4 = tpu.matmul %1, %3, %cst {dimension_numbers = #tpu.dot_dimension_numbers<[2], [1], [1], [2], [0, 0, 0, 1, 1, 2], [0], [0]>} : vector<4x4x8xf32>, vector<4x8x4xf32>, vector<4x4x4xf32> -> vector<4x4x4xf32>
    "tpu.trace_stop"() : () -> ()
    %cst_7 = arith.constant 0.353553385 : f32
    %5 = vector.broadcast %cst_7 : f32 to vector<4x4x4xf32>
    %6 = arith.mulf %4, %5 : vector<4x4x4xf32>
    %cst_8 = arith.constant dense<0xFF800000> : vector<4x4xf32>
    %7 = vector.multi_reduction <maximumf>, %6, %cst_8 [2] : vector<4x4x4xf32> to vector<4x4xf32>
    %8 = vector.shape_cast %7 : vector<4x4xf32> to vector<4x4x1xf32>
    %9 = vector.broadcast %8 : vector<4x4x1xf32> to vector<4x4x4xf32>
    %10 = arith.subf %6, %9 : vector<4x4x4xf32>
    %11 = math.exp %10 : vector<4x4x4xf32>
    %cst_9 = arith.constant dense<0.000000e+00> : vector<4x4xf32>
    %12 = vector.multi_reduction <add>, %11, %cst_9 [2] : vector<4x4x4xf32> to vector<4x4xf32>
    %13 = vector.shape_cast %12 : vector<4x4xf32> to vector<4x4x1xf32>
    %14 = tpu.reciprocal %13 {approx = true} : vector<4x4x1xf32> -> vector<4x4x1xf32>
    %15 = vector.broadcast %14 : vector<4x4x1xf32> to vector<4x4x4xf32>
    %16 = arith.mulf %11, %15 : vector<4x4x4xf32>
    %c0_10 = arith.constant 0 : index
    %c0_11 = arith.constant 0 : index
    %c0_12 = arith.constant 0 : index
    %c0_13 = arith.constant 0 : index
    %17 = vector.load %arg3[%c0_10, %c0_11, %c0_12, %c0_13] : memref<1x4x4x8xf32, #tpu.memory_space<vmem>>, vector<1x4x4x8xf32>
    %18 = vector.shape_cast %17 : vector<1x4x4x8xf32> to vector<4x4x8xf32>
    "tpu.trace_start"() <{level = 10 : i32, message = "huk,hkd->hud"}> : () -> ()
    %cst_14 = arith.constant dense<0.000000e+00> : vector<4x4x8xf32>
    %19 = tpu.matmul %16, %18, %cst_14 {dimension_numbers = #tpu.dot_dimension_numbers<[2], [1], [1], [2], [0, 0, 0, 1, 1, 2], [0], [0]>} : vector<4x4x4xf32>, vector<4x4x8xf32>, vector<4x4x8xf32> -> vector<4x4x8xf32>
    "tpu.trace_stop"() : () -> ()
    %c0_15 = arith.constant 0 : index
    %c0_16 = arith.constant 0 : index
    %c0_17 = arith.constant 0 : index
    %c0_18 = arith.constant 0 : index
    %20 = vector.load %arg4[%c0_15, %c0_16, %c0_17, %c0_18] : memref<1x4x4x8xf32, #tpu.memory_space<vmem>>, vector<1x4x4x8xf32>
    %21 = vector.shape_cast %20 : vector<1x4x4x8xf32> to vector<4x4x8xf32>
    %22 = vector.shape_cast %19 : vector<4x4x8xf32> to vector<1x4x4x8xf32>
    tpu.vector_store %arg4[%c0_15, %c0_16, %c0_17, %c0_18], %22 {strides = array<i32>} : memref<1x4x4x8xf32, #tpu.memory_space<vmem>>, vector<1x4x4x8xf32>,
    return
  }
  func.func @transform_0(%arg0: i32) -> (i32, i32, i32, i32) {
    %c0_i32 = arith.constant 0 : i32
    %c0_i32_0 = arith.constant 0 : i32
    %c0_i32_1 = arith.constant 0 : i32
    %c0_i32_2 = arith.constant 0 : i32
    return %arg0, %c0_i32, %c0_i32_0, %c0_i32_1 : i32, i32, i32, i32
  }
  func.func @transform_1(%arg0: i32) -> (i32, i32, i32, i32) {
    %c0_i32 = arith.constant 0 : i32
    %c0_i32_0 = arith.constant 0 : i32
    %c0_i32_1 = arith.constant 0 : i32
    %c0_i32_2 = arith.constant 0 : i32
    return %arg0, %c0_i32, %c0_i32_0, %c0_i32_1 : i32, i32, i32, i32
  }
  func.func @transform_2(%arg0: i32) -> (i32, i32, i32, i32) {
    %c0_i32 = arith.constant 0 : i32
    %c0_i32_0 = arith.constant 0 : i32
    %c0_i32_1 = arith.constant 0 : i32
    %c0_i32_2 = arith.constant 0 : i32
    return %arg0, %c0_i32, %c0_i32_0, %c0_i32_1 : i32, i32, i32, i32
  }
  func.func @transform_3(%arg0: i32) -> (i32, i32, i32, i32) {
    %c0_i32 = arith.constant 0 : i32
    %c0_i32_0 = arith.constant 0 : i32
    %c0_i32_1 = arith.constant 0 : i32
    %c0_i32_2 = arith.constant 0 : i32
    return %arg0, %c0_i32, %c0_i32_0, %c0_i32_1 : i32, i32, i32, i32
  }
}

module attributes {stable_mosaic.version = 11 : i64} {
  func.func @_ffn_ln_kernel(%arg0: i32, %arg1: memref<8x32xf32, #tpu.memory_space<vmem>>, %arg2: memref<32x64xf32, #tpu.memory_space<vmem>>, %arg3: memref<1x64xf32, #tpu.memory_space<vmem>>, %arg4: memref<64x32xf32, #tpu.memory_space<vmem>>, %arg5: memref<1x32xf32, #tpu.memory_space<vmem>>, %arg6: memref<1x32xf32, #tpu.memory_space<vmem>>, %arg7: memref<1x32xf32, #tpu.memory_space<vmem>>, %arg8: memref<8x32xf32, #tpu.memory_space<vmem>>) attributes {dimension_semantics = [#tpu.dimension_semantics<parallel>], iteration_bounds = array<i64: 1>, scalar_prefetch = 0 : i64, scratch_operands = 0 : i64, tpu.core_type = #tpu.core_type<tc>, window_params = [{transform_indices = @transform_0, window_bounds = array<i64: 8, 32>}, {pipeline_mode = #tpu.pipeline_mode<synchronous>, transform_indices = @transform_1, window_bounds = array<i64: 32, 64>}, {pipeline_mode = #tpu.pipeline_mode<synchronous>, transform_indices = @transform_2, window_bounds = array<i64: 1, 64>}, {pipeline_mode = #tpu.pipeline_mode<synchronous>, transform_indices = @transform_3, window_bounds = array<i64: 64, 32>}, {pipeline_mode = #tpu.pipeline_mode<synchronous>, transform_indices = @transform_4, window_bounds = array<i64: 1, 32>}, {pipeline_mode = #tpu.pipeline_mode<synchronous>, transform_indices = @transform_5, window_bounds = array<i64: 1, 32>}, {pipeline_mode = #tpu.pipeline_mode<synchronous>, transform_indices = @transform_6, window_bounds = array<i64: 1, 32>}, {transform_indices = @transform_7, window_bounds = array<i64: 8, 32>}]} {
    %c0 = arith.constant 0 : index
    %c0_0 = arith.constant 0 : index
    %0 = vector.load %arg1[%c0, %c0_0] : memref<8x32xf32, #tpu.memory_space<vmem>>, vector<8x32xf32>
    %c0_1 = arith.constant 0 : index
    %c0_2 = arith.constant 0 : index
    %1 = vector.load %arg2[%c0_1, %c0_2] : memref<32x64xf32, #tpu.memory_space<vmem>>, vector<32x64xf32>
    %cst = arith.constant dense<0.000000e+00> : vector<8x64xf32>
    %2 = tpu.matmul %0, %1, %cst {dimension_numbers = #tpu.dot_dimension_numbers<[1], [0], [0], [1], [0, 0, 1, 1], [], []>} : vector<8x32xf32>, vector<32x64xf32>, vector<8x64xf32> -> vector<8x64xf32>
    %c0_3 = arith.constant 0 : index
    %c0_4 = arith.constant 0 : index
    %3 = vector.load %arg3[%c0_3, %c0_4] : memref<1x64xf32, #tpu.memory_space<vmem>>, vector<1x64xf32>
    %4 = vector.broadcast %3 : vector<1x64xf32> to vector<8x64xf32>
    %5 = arith.addf %2, %4 : vector<8x64xf32>
    %cst_5 = arith.constant 0.000000e+00 : f32
    %6 = vector.broadcast %cst_5 : f32 to vector<8x64xf32>
    %7 = arith.maximumf %5, %6 : vector<8x64xf32>
    %c0_6 = arith.constant 0 : index
    %c0_7 = arith.constant 0 : index
    %8 = vector.load %arg4[%c0_6, %c0_7] : memref<64x32xf32, #tpu.memory_space<vmem>>, vector<64x32xf32>
    %cst_8 = arith.constant dense<0.000000e+00> : vector<8x32xf32>
    %9 = tpu.matmul %7, %8, %cst_8 {dimension_numbers = #tpu.dot_dimension_numbers<[1], [0], [0], [1], [0, 0, 1, 1], [], []>} : vector<8x64xf32>, vector<64x32xf32>, vector<8x32xf32> -> vector<8x32xf32>
    %c0_9 = arith.constant 0 : index
    %c0_10 = arith.constant 0 : index
    %10 = vector.load %arg5[%c0_9, %c0_10] : memref<1x32xf32, #tpu.memory_space<vmem>>, vector<1x32xf32>
    %11 = vector.broadcast %10 : vector<1x32xf32> to vector<8x32xf32>
    %12 = arith.addf %9, %11 : vector<8x32xf32>
    %13 = arith.addf %12, %0 : vector<8x32xf32>
    %cst_11 = arith.constant dense<0.000000e+00> : vector<8xf32>
    %14 = vector.multi_reduction <add>, %13, %cst_11 [1] : vector<8x32xf32> to vector<8xf32>
    %15 = vector.shape_cast %14 : vector<8xf32> to vector<8x1xf32>
    %cst_12 = arith.constant 3.200000e+01 : f32
    %16 = vector.broadcast %cst_12 : f32 to vector<8x1xf32>
    %17 = arith.divf %15, %16 : vector<8x1xf32>
    %18 = vector.broadcast %17 : vector<8x1xf32> to vector<8x32xf32>
    %19 = arith.subf %13, %18 : vector<8x32xf32>
    %20 = arith.mulf %19, %19 : vector<8x32xf32>
    %cst_13 = arith.constant dense<0.000000e+00> : vector<8xf32>
    %21 = vector.multi_reduction <add>, %20, %cst_13 [1] : vector<8x32xf32> to vector<8xf32>
    %22 = vector.shape_cast %21 : vector<8xf32> to vector<8x1xf32>
    %cst_14 = arith.constant 3.200000e+01 : f32
    %23 = vector.broadcast %cst_14 : f32 to vector<8x1xf32>
    %24 = arith.divf %22, %23 : vector<8x1xf32>
    %cst_15 = arith.constant 9.99999974E-6 : f32
    %25 = vector.broadcast %cst_15 : f32 to vector<8x1xf32>
    %26 = arith.addf %24, %25 : vector<8x1xf32>
    %27 = math.rsqrt %26 : vector<8x1xf32>
    %28 = vector.broadcast %27 : vector<8x1xf32> to vector<8x32xf32>
    %29 = arith.mulf %19, %28 : vector<8x32xf32>
    %c0_16 = arith.constant 0 : index
    %c0_17 = arith.constant 0 : index
    %30 = vector.load %arg6[%c0_16, %c0_17] : memref<1x32xf32, #tpu.memory_space<vmem>>, vector<1x32xf32>
    %31 = vector.broadcast %30 : vector<1x32xf32> to vector<8x32xf32>
    %32 = arith.mulf %29, %31 : vector<8x32xf32>
    %c0_18 = arith.constant 0 : index
    %c0_19 = arith.constant 0 : index
    %33 = vector.load %arg7[%c0_18, %c0_19] : memref<1x32xf32, #tpu.memory_space<vmem>>, vector<1x32xf32>
    %34 = vector.broadcast %33 : vector<1x32xf32> to vector<8x32xf32>
    %35 = arith.addf %32, %34 : vector<8x32xf32>
    %c0_20 = arith.constant 0 : index
    %c0_21 = arith.constant 0 : index
    %36 = vector.load %arg8[%c0_20, %c0_21] : memref<8x32xf32, #tpu.memory_space<vmem>>, vector<8x32xf32>
    tpu.vector_store %arg8[%c0_20, %c0_21], %35 {strides = array<i32>} : memref<8x32xf32, #tpu.memory_space<vmem>>, vector<8x32xf32>,
    return
  }
  func.func @transform_0(%arg0: i32) -> (i32, i32) {
    %c0_i32 = arith.constant 0 : i32
    %c0_i32_0 = arith.constant 0 : i32
    return %arg0, %c0_i32 : i32, i32
  }
  func.func @transform_1(%arg0: i32) -> (i32, i32) {
    %c0_i32 = arith.constant 0 : i32
    %c0_i32_0 = arith.constant 0 : i32
    %c0_i32_1 = arith.constant 0 : i32
    return %c0_i32, %c0_i32_0 : i32, i32
  }
  func.func @transform_2(%arg0: i32) -> (i32, i32) {
    %c0_i32 = arith.constant 0 : i32
    %c0_i32_0 = arith.constant 0 : i32
    %c0_i32_1 = arith.constant 0 : i32
    return %c0_i32, %c0_i32_0 : i32, i32
  }
  func.func @transform_3(%arg0: i32) -> (i32, i32) {
    %c0_i32 = arith.constant 0 : i32
    %c0_i32_0 = arith.constant 0 : i32
    %c0_i32_1 = arith.constant 0 : i32
    return %c0_i32, %c0_i32_0 : i32, i32
  }
  func.func @transform_4(%arg0: i32) -> (i32, i32) {
    %c0_i32 = arith.constant 0 : i32
    %c0_i32_0 = arith.constant 0 : i32
    %c0_i32_1 = arith.constant 0 : i32
    return %c0_i32, %c0_i32_0 : i32, i32
  }
  func.func @transform_5(%arg0: i32) -> (i32, i32) {
    %c0_i32 = arith.constant 0 : i32
    %c0_i32_0 = arith.constant 0 : i32
    %c0_i32_1 = arith.constant 0 : i32
    return %c0_i32, %c0_i32_0 : i32, i32
  }
  func.func @transform_6(%arg0: i32) -> (i32, i32) {
    %c0_i32 = arith.constant 0 : i32
    %c0_i32_0 = arith.constant 0 : i32
    %c0_i32_1 = arith.constant 0 : i32
    return %c0_i32, %c0_i32_0 : i32, i32
  }
  func.func @transform_7(%arg0: i32) -> (i32, i32) {
    %c0_i32 = arith.constant 0 : i32
    %c0_i32_0 = arith.constant 0 : i32
    return %arg0, %c0_i32 : i32, i32
  }
}

module attributes {stable_mosaic.version = 11 : i64} {
  func.func @_matmul_add_ln_kernel(%arg0: i32, %arg1: memref<8x32xf32, #tpu.memory_space<vmem>>, %arg2: memref<32x32xf32, #tpu.memory_space<vmem>>, %arg3: memref<1x32xf32, #tpu.memory_space<vmem>>, %arg4: memref<8x32xf32, #tpu.memory_space<vmem>>, %arg5: memref<1x32xf32, #tpu.memory_space<vmem>>, %arg6: memref<1x32xf32, #tpu.memory_space<vmem>>, %arg7: memref<8x32xf32, #tpu.memory_space<vmem>>) attributes {dimension_semantics = [#tpu.dimension_semantics<parallel>], iteration_bounds = array<i64: 1>, scalar_prefetch = 0 : i64, scratch_operands = 0 : i64, tpu.core_type = #tpu.core_type<tc>, window_params = [{transform_indices = @transform_0, window_bounds = array<i64: 8, 32>}, {pipeline_mode = #tpu.pipeline_mode<synchronous>, transform_indices = @transform_1, window_bounds = array<i64: 32, 32>}, {pipeline_mode = #tpu.pipeline_mode<synchronous>, transform_indices = @transform_2, window_bounds = array<i64: 1, 32>}, {transform_indices = @transform_3, window_bounds = array<i64: 8, 32>}, {pipeline_mode = #tpu.pipeline_mode<synchronous>, transform_indices = @transform_4, window_bounds = array<i64: 1, 32>}, {pipeline_mode = #tpu.pipeline_mode<synchronous>, transform_indices = @transform_5, window_bounds = array<i64: 1, 32>}, {transform_indices = @transform_6, window_bounds = array<i64: 8, 32>}]} {
    %c0 = arith.constant 0 : index
    %c0_0 = arith.constant 0 : index
    %0 = vector.load %arg1[%c0, %c0_0] : memref<8x32xf32, #tpu.memory_space<vmem>>, vector<8x32xf32>
    %c0_1 = arith.constant 0 : index
    %c0_2 = arith.constant 0 : index
    %1 = vector.load %arg2[%c0_1, %c0_2] : memref<32x32xf32, #tpu.memory_space<vmem>>, vector<32x32xf32>
    %cst = arith.constant dense<0.000000e+00> : vector<8x32xf32>
    %2 = tpu.matmul %0, %1, %cst {dimension_numbers = #tpu.dot_dimension_numbers<[1], [0], [0], [1], [0, 0, 1, 1], [], []>} : vector<8x32xf32>, vector<32x32xf32>, vector<8x32xf32> -> vector<8x32xf32>
    %c0_3 = arith.constant 0 : index
    %c0_4 = arith.constant 0 : index
    %3 = vector.load %arg3[%c0_3, %c0_4] : memref<1x32xf32, #tpu.memory_space<vmem>>, vector<1x32xf32>
    %4 = vector.broadcast %3 : vector<1x32xf32> to vector<8x32xf32>
    %5 = arith.addf %2, %4 : vector<8x32xf32>
    %c0_5 = arith.constant 0 : index
    %c0_6 = arith.constant 0 : index
    %6 = vector.load %arg4[%c0_5, %c0_6] : memref<8x32xf32, #tpu.memory_space<vmem>>, vector<8x32xf32>
    %7 = arith.addf %5, %6 : vector<8x32xf32>
    %cst_7 = arith.constant dense<0.000000e+00> : vector<8xf32>
    %8 = vector.multi_reduction <add>, %7, %cst_7 [1] : vector<8x32xf32> to vector<8xf32>
    %9 = vector.shape_cast %8 : vector<8xf32> to vector<8x1xf32>
    %cst_8 = arith.constant 3.200000e+01 : f32
    %10 = vector.broadcast %cst_8 : f32 to vector<8x1xf32>
    %11 = arith.divf %9, %10 : vector<8x1xf32>
    %12 = vector.broadcast %11 : vector<8x1xf32> to vector<8x32xf32>
    %13 = arith.subf %7, %12 : vector<8x32xf32>
    %14 = arith.mulf %13, %13 : vector<8x32xf32>
    %cst_9 = arith.constant dense<0.000000e+00> : vector<8xf32>
    %15 = vector.multi_reduction <add>, %14, %cst_9 [1] : vector<8x32xf32> to vector<8xf32>
    %16 = vector.shape_cast %15 : vector<8xf32> to vector<8x1xf32>
    %cst_10 = arith.constant 3.200000e+01 : f32
    %17 = vector.broadcast %cst_10 : f32 to vector<8x1xf32>
    %18 = arith.divf %16, %17 : vector<8x1xf32>
    %cst_11 = arith.constant 9.99999974E-6 : f32
    %19 = vector.broadcast %cst_11 : f32 to vector<8x1xf32>
    %20 = arith.addf %18, %19 : vector<8x1xf32>
    %21 = math.rsqrt %20 : vector<8x1xf32>
    %22 = vector.broadcast %21 : vector<8x1xf32> to vector<8x32xf32>
    %23 = arith.mulf %13, %22 : vector<8x32xf32>
    %c0_12 = arith.constant 0 : index
    %c0_13 = arith.constant 0 : index
    %24 = vector.load %arg5[%c0_12, %c0_13] : memref<1x32xf32, #tpu.memory_space<vmem>>, vector<1x32xf32>
    %25 = vector.broadcast %24 : vector<1x32xf32> to vector<8x32xf32>
    %26 = arith.mulf %23, %25 : vector<8x32xf32>
    %c0_14 = arith.constant 0 : index
    %c0_15 = arith.constant 0 : index
    %27 = vector.load %arg6[%c0_14, %c0_15] : memref<1x32xf32, #tpu.memory_space<vmem>>, vector<1x32xf32>
    %28 = vector.broadcast %27 : vector<1x32xf32> to vector<8x32xf32>
    %29 = arith.addf %26, %28 : vector<8x32xf32>
    %c0_16 = arith.constant 0 : index
    %c0_17 = arith.constant 0 : index
    %30 = vector.load %arg7[%c0_16, %c0_17] : memref<8x32xf32, #tpu.memory_space<vmem>>, vector<8x32xf32>
    tpu.vector_store %arg7[%c0_16, %c0_17], %29 {strides = array<i32>} : memref<8x32xf32, #tpu.memory_space<vmem>>, vector<8x32xf32>,
    return
  }
  func.func @transform_0(%arg0: i32) -> (i32, i32) {
    %c0_i32 = arith.constant 0 : i32
    %c0_i32_0 = arith.constant 0 : i32
    return %arg0, %c0_i32 : i32, i32
  }
  func.func @transform_1(%arg0: i32) -> (i32, i32) {
    %c0_i32 = arith.constant 0 : i32
    %c0_i32_0 = arith.constant 0 : i32
    %c0_i32_1 = arith.constant 0 : i32
    return %c0_i32, %c0_i32_0 : i32, i32
  }
  func.func @transform_2(%arg0: i32) -> (i32, i32) {
    %c0_i32 = arith.constant 0 : i32
    %c0_i32_0 = arith.constant 0 : i32
    %c0_i32_1 = arith.constant 0 : i32
    return %c0_i32, %c0_i32_0 : i32, i32
  }
  func.func @transform_3(%arg0: i32) -> (i32, i32) {
    %c0_i32 = arith.constant 0 : i32
    %c0_i32_0 = arith.constant 0 : i32
    return %arg0, %c0_i32 : i32, i32
  }
  func.func @transform_4(%arg0: i32) -> (i32, i32) {
    %c0_i32 = arith.constant 0 : i32
    %c0_i32_0 = arith.constant 0 : i32
    %c0_i32_1 = arith.constant 0 : i32
    return %c0_i32, %c0_i32_0 : i32, i32
  }
  func.func @transform_5(%arg0: i32) -> (i32, i32) {
    %c0_i32 = arith.constant 0 : i32
    %c0_i32_0 = arith.constant 0 : i32
    %c0_i32_1 = arith.constant 0 : i32
    return %c0_i32, %c0_i32_0 : i32, i32
  }
  func.func @transform_6(%arg0: i32) -> (i32, i32) {
    %c0_i32 = arith.constant 0 : i32
    %c0_i32_0 = arith.constant 0 : i32
    return %arg0, %c0_i32 : i32, i32
  }
}

module attributes {stable_mosaic.version = 11 : i64} {
  func.func @_layernorm_kernel(%arg0: i32, %arg1: memref<8x32xf32, #tpu.memory_space<vmem>>, %arg2: memref<1x32xf32, #tpu.memory_space<vmem>>, %arg3: memref<1x32xf32, #tpu.memory_space<vmem>>, %arg4: memref<8x32xf32, #tpu.memory_space<vmem>>) attributes {dimension_semantics = [#tpu.dimension_semantics<parallel>], iteration_bounds = array<i64: 1>, scalar_prefetch = 0 : i64, scratch_operands = 0 : i64, tpu.core_type = #tpu.core_type<tc>, window_params = [{transform_indices = @transform_0, window_bounds = array<i64: 8, 32>}, {pipeline_mode = #tpu.pipeline_mode<synchronous>, transform_indices = @transform_1, window_bounds = array<i64: 1, 32>}, {pipeline_mode = #tpu.pipeline_mode<synchronous>, transform_indices = @transform_2, window_bounds = array<i64: 1, 32>}, {transform_indices = @transform_3, window_bounds = array<i64: 8, 32>}]} {
    %c0 = arith.constant 0 : index
    %c0_0 = arith.constant 0 : index
    %0 = vector.load %arg1[%c0, %c0_0] : memref<8x32xf32, #tpu.memory_space<vmem>>, vector<8x32xf32>
    %cst = arith.constant dense<0.000000e+00> : vector<8xf32>
    %1 = vector.multi_reduction <add>, %0, %cst [1] : vector<8x32xf32> to vector<8xf32>
    %2 = vector.shape_cast %1 : vector<8xf32> to vector<8x1xf32>
    %cst_1 = arith.constant 3.200000e+01 : f32
    %3 = vector.broadcast %cst_1 : f32 to vector<8x1xf32>
    %4 = arith.divf %2, %3 : vector<8x1xf32>
    %5 = vector.broadcast %4 : vector<8x1xf32> to vector<8x32xf32>
    %6 = arith.subf %0, %5 : vector<8x32xf32>
    %7 = arith.mulf %6, %6 : vector<8x32xf32>
    %cst_2 = arith.constant dense<0.000000e+00> : vector<8xf32>
    %8 = vector.multi_reduction <add>, %7, %cst_2 [1] : vector<8x32xf32> to vector<8xf32>
    %9 = vector.shape_cast %8 : vector<8xf32> to vector<8x1xf32>
    %cst_3 = arith.constant 3.200000e+01 : f32
    %10 = vector.broadcast %cst_3 : f32 to vector<8x1xf32>
    %11 = arith.divf %9, %10 : vector<8x1xf32>
    %cst_4 = arith.constant 9.99999974E-6 : f32
    %12 = vector.broadcast %cst_4 : f32 to vector<8x1xf32>
    %13 = arith.addf %11, %12 : vector<8x1xf32>
    %14 = math.rsqrt %13 : vector<8x1xf32>
    %15 = vector.broadcast %14 : vector<8x1xf32> to vector<8x32xf32>
    %16 = arith.mulf %6, %15 : vector<8x32xf32>
    %c0_5 = arith.constant 0 : index
    %c0_6 = arith.constant 0 : index
    %17 = vector.load %arg2[%c0_5, %c0_6] : memref<1x32xf32, #tpu.memory_space<vmem>>, vector<1x32xf32>
    %18 = vector.broadcast %17 : vector<1x32xf32> to vector<8x32xf32>
    %19 = arith.mulf %16, %18 : vector<8x32xf32>
    %c0_7 = arith.constant 0 : index
    %c0_8 = arith.constant 0 : index
    %20 = vector.load %arg3[%c0_7, %c0_8] : memref<1x32xf32, #tpu.memory_space<vmem>>, vector<1x32xf32>
    %21 = vector.broadcast %20 : vector<1x32xf32> to vector<8x32xf32>
    %22 = arith.addf %19, %21 : vector<8x32xf32>
    %c0_9 = arith.constant 0 : index
    %c0_10 = arith.constant 0 : index
    %23 = vector.load %arg4[%c0_9, %c0_10] : memref<8x32xf32, #tpu.memory_space<vmem>>, vector<8x32xf32>
    tpu.vector_store %arg4[%c0_9, %c0_10], %22 {strides = array<i32>} : memref<8x32xf32, #tpu.memory_space<vmem>>, vector<8x32xf32>,
    return
  }
  func.func @transform_0(%arg0: i32) -> (i32, i32) {
    %c0_i32 = arith.constant 0 : i32
    %c0_i32_0 = arith.constant 0 : i32
    return %arg0, %c0_i32 : i32, i32
  }
  func.func @transform_1(%arg0: i32) -> (i32, i32) {
    %c0_i32 = arith.constant 0 : i32
    %c0_i32_0 = arith.constant 0 : i32
    %c0_i32_1 = arith.constant 0 : i32
    return %c0_i32, %c0_i32_0 : i32, i32
  }
  func.func @transform_2(%arg0: i32) -> (i32, i32) {
    %c0_i32 = arith.constant 0 : i32
    %c0_i32_0 = arith.constant 0 : i32
    %c0_i32_1 = arith.constant 0 : i32
    return %c0_i32, %c0_i32_0 : i32, i32
  }
  func.func @transform_3(%arg0: i32) -> (i32, i32) {
    %c0_i32 = arith.constant 0 : i32
    %c0_i32_0 = arith.constant 0 : i32
    return %arg0, %c0_i32 : i32, i32
  }
}

</mosaic_0001>

<bundles_post_ra>
// kernel: _lambda_.11
= control target key start
LH: loop header
LB: loop body
LE: loop exit
PB: predicated region body
PF: predicated region fallthrough
CT: control target
= control target key end

     0   :  { %vm27_vm0 = vcmask 261120   ;;  %vm109_vm1 = vcmask 785408   ;;  %s191_s1 = inlined_call_operand.vmem [shape: f32[32,96], index: 1, kind: input, shape index: {}]   ;;  %s192_s0 = inlined_call_operand.vmem [shape: f32[16,32], index: 0, kind: input, shape index: {}]   ;;  %s193_s2 = inlined_call_operand.vmem [shape: f32[1,96], index: 2, kind: input, shape index: {}]   ;;  %s194_s3 = inlined_call_operand.vmem [shape: f32[16,96], index: 3, kind: output, shape index: {}]  }
   0x1   :  { %v16_v0 = vld [vmem:[%s191_s1] sm:$0xff]  ;;  %v17_v1 = vld [vmem:[%s191_s1 + $0x8] sm:$0xff]  ;;  %v18_v2 = vld [vmem:[%s191_s1 + $0x10] sm:$0xff] }
   0x2   :  { %v136_v3 = vpack.c.bf16 %v17_v1, %v16_v0  ;;  %v19_v4 = vld [vmem:[%s191_s1 + $0x18] sm:$0xff]  ;;  %v14_v5 = vld [vmem:[%s192_s0] sm:$0xff]  ;;  %v15_v7 = vld [vmem:[%s192_s0 + $0x8] sm:$0xff] }
   0x3   :  { %v140_v6 = vpack.c.bf16 %v19_v4, %v18_v2  ;;  %133 = vmatprep.mubr.msk.f32.mxu0 %vm27_vm0, %v14_v5  ;;  %v116_v8 = vld [vmem:[%s193_s2] ss:$0 sm:$0xff] }
   0x4   :  { %137 = vmatprep.subr.bf16.mxu0 %v136_v3 }
   0x5   :  { %139 = vmatpush3.bf16.msra.mxu0 %v136_v3 }
   0x6   :  { %141 = vmatprep.subr.bf16.mxu0 %v140_v6 }
   0x9   :  { %143 = vmatpush3.bf16.msra.mxu0 %v140_v6 }
   0xc   :  { %134 = vmatmul.mubr.msk.f32.vlgmr.msra.gmra.mrb[0].mxu0 %vm27_vm0, %v15_v7 }
  0xdf   :  { %v135_v9 = vpop.f32.mrb[0].mxu0 }
  0xe0   :  { %v106_v10 = vadd.f32 %v135_v9, %v116_v8  ;;  %v100_v11 = vpop.f32.mrb[1].mxu0 }
  0xe1   :  { %v101_v12 = vadd.f32 %v116_v8, %v100_v11 }
  0xe2   :  { %111 = vst.msk [vmem:[%s194_s3 + $0x8] sm:$0xff] %vm109_vm1, %v106_v10 }
  0xe3   :  { %110 = vst.msk [vmem:[%s194_s3] sm:$0xff] %vm109_vm1, %v101_v12 }

// kernel: _lambda_.12
= control target key start
LH: loop header
LB: loop body
LE: loop exit
PB: predicated region body
PF: predicated region fallthrough
CT: control target
= control target key end

     0   :  { %s1078_s12 = smov 0   ;;  %s1151_s0 = inlined_call_operand.vmem [shape: f32[2,4,8,8], index: 0, kind: input, shape index: {}]   ;;  %s1152_s1 = inlined_call_operand.vmem [shape: f32[2,4,8,8], index: 1, kind: input, shape index: {}]   ;;  %s1153_s2 = inlined_call_operand.vmem [shape: f32[2,4,8,8], index: 2, kind: input, shape index: {}]   ;;  %s1154_s3 = inlined_call_operand.vmem [shape: f32[2,4,8,8], index: 3, kind: output, shape index: {}]  }
   0x1 LB: > { %s939_s13 = sadd.s32 4294967295, %s1054_s12   ;;  %p943_p0 = scmp.ge.s32.totalorder %s1054_s12, 1  ;;  %s1054_s12 = sphi %s1078_s12, %s13_s12  }
   0x2   : > { %p157_p1 = scmp.lt.s32.totalorder %s1054_s12, 3 }
   0x4   : > { %p158_p2 = pnand %p943_p0, %p157_p1 }
   0x5   : > { %p191_p3 = scmp.lt.s32.totalorder (!%p158_p2), %s939_s13, 1  ;;  %v1056_v0 = vmov (!%p158_p2), 0.0   ;;  %vm1057_vm0 = vmmov (!%p158_p2), 0   ;;  %vm219_vm1 = vcmask (!%p158_p2), 64512  }
   0x6   : > { %161 = sbr.rel (%p158_p2) target bundleno = 767 (0x2ff), region = 32  ;;  %982 = vmatprep.subr.mxu0 (!%p158_p2), %v1056_v0  ;;  %984 = vmatprep.mubr.msk.f32.mxu0 (!%p158_p2), %vm1057_vm0, %v1056_v0 }
   0x7   : > { %987 = vmatprep.subr.mxu1 (!%p158_p2), %v1056_v0  ;;  %989 = vmatprep.mubr.msk.f32.mxu1 (!%p158_p2), %vm1057_vm0, %v1056_v0 }
   0xd   : > { %s1156_s13 = smov (!%p191_p3, %s939_s13), 1 }
   0xe   : > { %s1092_s14 = sshll.u32 %s1156_s13, 5 }
   0xf   : > { %s200_s17 = scalar_lea.vmem %s1152_s1, %s1092_s14  ;;  %s195_s20 = scalar_lea.vmem %s1151_s0, %s1092_s14 }
  0x10   : > { %v215_v1 = vld [vmem:[%s200_s17] sm:$0xff]  ;;  %v217_v3 = vld [vmem:[%s200_s17 + $0x10] sm:$0xff]  ;;  %v216_v4 = vld [vmem:[%s200_s17 + $0x8] sm:$0xff]  ;;  %s205_s23 = scalar_lea.vmem %s1153_s2, %s1092_s14  ;;  %s210_s26 = scalar_lea.vmem %s1154_s3, %s1092_s14 }
  0x11   : > { %v211_v2 = vld [vmem:[%s195_s20] sm:$0xff]  ;;  %983 = vmatpush3.msra.mxu0 %v215_v1  ;;  %v212_v5 = vld [vmem:[%s195_s20 + $0x8] sm:$0xff]  ;;  %988 = vmatpush3.msra.mxu1 %v216_v4  ;;  %v213_v6 = vld [vmem:[%s195_s20 + $0x10] sm:$0xff] }
  0x12   : > { %985 = vmatmul.mubr.msk.f32.vlgmr.msra.gmra.mrb[0].mxu0 %vm219_vm1, %v211_v2  ;;  %992 = vmatprep.subr.mxu0 %v1056_v0  ;;  %v218_v7 = vld [vmem:[%s200_s17 + $0x18] sm:$0xff]  ;;  %v560_v45 = vld [vmem:[%s205_s23] sm:$0xff]  ;;  %v561_v46 = vld [vmem:[%s205_s23 + $0x8] sm:$0xff] }
  0x13   : > { %993 = vmatpush3.msra.mxu0 %v217_v3  ;;  %994 = vmatprep.mubr.msk.f32.mxu0 %vm1057_vm0, %v1056_v0  ;;  %v214_v8 = vld [vmem:[%s195_s20 + $0x18] sm:$0xff]  ;;  %v562_v53 = vld [vmem:[%s205_s23 + $0x10] sm:$0xff] }
  0x14   : > { %990 = vmatmul.mubr.msk.f32.vlgmr.msra.gmra.mrb[0].mxu1 %vm219_vm1, %v212_v5  ;;  %997 = vmatprep.subr.mxu1 %v1056_v0  ;;  %v563_v57 = vld [vmem:[%s205_s23 + $0x18] sm:$0xff] }
  0x15   : > { %999 = vmatprep.mubr.msk.f32.mxu1 %vm1057_vm0, %v1056_v0  ;;  %998 = vmatpush3.msra.mxu1 %v218_v7 }
  0x16   : > { %995 = vmatmul.mubr.msk.f32.vlgmr.msra.gmra.mrb[2].mxu0 %vm219_vm1, %v213_v6  ;;  %1002 = vmatprep.subr.mxu0 %v1056_v0 }
  0x17   : > { %1004 = vmatprep.mubr.msk.f32.mxu0 %vm1057_vm0, %v1056_v0  ;;  %1007 = vmatprep.subr.mxu1 %v1056_v0 }
  0x18   : > { %1000 = vmatmul.mubr.msk.f32.vlgmr.msra.gmra.mrb[2].mxu1 %vm219_vm1, %v214_v8  ;;  %1003 = vmatpush3.msra.mxu0 %v560_v45 }
  0x19   : > { %1009 = vmatprep.mubr.msk.f32.mxu1 %vm1057_vm0, %v1056_v0  ;;  %1012 = vmatprep.subr.mxu0 %v1056_v0 }
  0x1a   : > { %1008 = vmatpush3.msra.mxu1 %v561_v46 }
  0x1b   : > { %1017 = vmatprep.subr.mxu1 %v1056_v0 }
  0xe5   : > { %v289_v9 = vpop.f32.mrb[0].mxu0 }
  0xe6   : > { %v512_v10 = vmul.f32 0.35355338, %v289_v9  ;;  %v986_v11 = vpop.f32.mrb[1].mxu0 }
  0xe7   : > { %v362_v12 = vpop.f32.mrb[0].mxu1 }
  0xe8   : > { %v513_v13 = vmul.f32 0.35355338, %v362_v12  ;;  %v516_v14 = vsel %vm219_vm1, %v512_v10, -inf  ;;  %v991_v15 = vpop.f32.mrb[1].mxu1 }
  0xe9   : > { %517 = vmax.xlane.f32.xlu0 %v516_v14  ;;  %v435_v16 = vpop.f32.mrb[2].mxu0 }
  0xea   : > { %v514_v17 = vmul.f32 0.35355338, %v435_v16  ;;  %v996_v18 = vpop.f32.mrb[3].mxu0  ;;  %v519_v19 = vsel %vm219_vm1, %v513_v13, -inf }
  0xeb   : > { %v508_v20 = vpop.f32.mrb[2].mxu1 }
  0xec   : > { %v515_v21 = vmul.f32 0.35355338, %v508_v20  ;;  %v522_v22 = vsel %vm219_vm1, %v514_v17, -inf  ;;  %v1001_v23 = vpop.f32.mrb[3].mxu1 }
  0xed   : > { %520 = vmax.xlane.f32.xlu0 %v519_v19  ;;  %523 = vmax.xlane.f32.xlu1 %v522_v22 }
  0xee   : > { %v525_v24 = vsel %vm219_vm1, %v515_v21, -inf }
  0xf1   : > { %526 = vmax.xlane.f32.xlu1 %v525_v24 }
 0x176   : > { %v518_v25 = vpop.xlane.xlu0 %517 }
 0x177   : > { %v528_v26 = vsub.f32 %v512_v10, %v518_v25 }
 0x179   : > { %v532_v27 = vmul.f32 1.442695, %v528_v26 }
 0x17a   : > { %v521_v28 = vpop.xlane.xlu0 %520  ;;  %v524_v29 = vpop.xlane.xlu1 %523 }
 0x17b   : > { %1032 = vpow2.f32 %v532_v27  ;;  %v529_v30 = vsub.f32 %v513_v13, %v521_v28  ;;  %v530_v31 = vsub.f32 %v514_v17, %v524_v29 }
 0x17d   : > { %v534_v32 = vmul.f32 1.442695, %v529_v30  ;;  %v536_v33 = vmul.f32 1.442695, %v530_v31 }
 0x17e   : > { %v527_v34 = vpop.xlane.xlu1 %526 }
 0x17f   : > { %1034 = vpow2.f32 %v534_v32  ;;  %v531_v35 = vsub.f32 %v515_v21, %v527_v34 }
 0x180   : > { %1036 = vpow2.f32 %v536_v33 }
 0x181   : > { %v538_v36 = vmul.f32 1.442695, %v531_v35 }
 0x183   : > { %1038 = vpow2.f32 %v538_v36 }
 0x185   : > { %v1033_v37 = vpop.eup %1032 }
 0x186   : > { %v540_v38 = vsel %vm219_vm1, %v1033_v37, 0.0 }
 0x187   : > { %541 = vadd.xlane.f32.xlu0 %v540_v38 }
 0x189   : > { %v1035_v39 = vpop.eup %1034 }
 0x18a   : > { %v1037_v40 = vpop.eup %1036  ;;  %v543_v41 = vsel %vm219_vm1, %v1035_v39, 0.0 }
 0x18b   : > { %544 = vadd.xlane.f32.xlu1 %v543_v41  ;;  %v546_v42 = vsel %vm219_vm1, %v1037_v40, 0.0 }
 0x18c   : > { %547 = vadd.xlane.f32.xlu0 %v546_v42 }
 0x18d   : > { %v1039_v43 = vpop.eup %1038 }
 0x18e   : > { %v549_v44 = vsel %vm219_vm1, %v1039_v43, 0.0 }
 0x18f   : > { %550 = vadd.xlane.f32.xlu1 %v549_v44 }
 0x214   : > { %v542_v47 = vpop.xlane.xlu0 %541 }
 0x215   : > { %1040 = vrcp.f32 %v542_v47 }
 0x218   : > { %v545_v48 = vpop.xlane.xlu1 %544 }
 0x219   : > { %v548_v49 = vpop.xlane.xlu0 %547  ;;  %1042 = vrcp.f32 %v545_v48 }
 0x21a   : > { %1044 = vrcp.f32 %v548_v49 }
 0x21c   : > { %v551_v50 = vpop.xlane.xlu1 %550 }
 0x21d   : > { %1046 = vrcp.f32 %v551_v50 }
 0x21f   : > { %v1041_v51 = vpop.eup %1040 }
 0x220   : > { %v556_v52 = vmul.f32 %v1041_v51, %v1033_v37 }
 0x222   : > { %1005 = vmatmul.mubr.msk.f32.vlgmr.msra.gmra.mrb[4].mxu0 %vm219_vm1, %v556_v52 }
 0x223   : > { %v1043_v54 = vpop.eup %1042  ;;  %1013 = vmatpush3.msra.mxu0 %v562_v53  ;;  %1014 = vmatprep.mubr.msk.f32.mxu0 %vm1057_vm0, %v1056_v0 }
 0x224   : > { %v1045_v55 = vpop.eup %1044  ;;  %v557_v56 = vmul.f32 %v1043_v54, %v1035_v39 }
 0x225   : > { %v558_v58 = vmul.f32 %v1045_v55, %v1037_v40 }
 0x226   : > { %1010 = vmatmul.mubr.msk.f32.vlgmr.msra.gmra.mrb[4].mxu1 %vm219_vm1, %v557_v56 }
 0x227   : > { %v1047_v59 = vpop.eup %1046  ;;  %1015 = vmatmul.mubr.msk.f32.vlgmr.msra.gmra.mrb[6].mxu0 %vm219_vm1, %v558_v58  ;;  %1018 = vmatpush3.msra.mxu1 %v563_v57 }
 0x228   : > { %v559_v60 = vmul.f32 %v1047_v59, %v1039_v43  ;;  %1019 = vmatprep.mubr.msk.f32.mxu1 %vm1057_vm0, %v1056_v0 }
 0x22a   : > { %1020 = vmatmul.mubr.msk.f32.vlgmr.msra.gmra.mrb[6].mxu1 %vm219_vm1, %v559_v60 }
 0x2f5   : > { %v633_v61 = vpop.f32.mrb[4].mxu0 }
 0x2f6   : > { %856 = vst.msk [vmem:[%s210_s26] sm:$0xff] %vm219_vm1, %v633_v61  ;;  %v1006_v62 = vpop.f32.mrb[5].mxu0 }
 0x2f9   : > { %v706_v63 = vpop.f32.mrb[4].mxu1 }
 0x2fa   : > { %857 = vst.msk [vmem:[%s210_s26 + $0x8] sm:$0xff] %vm219_vm1, %v706_v63  ;;  %v779_v1 = vpop.f32.mrb[6].mxu0  ;;  %v1011_v2 = vpop.f32.mrb[5].mxu1 }
 0x2fb   : > { %858 = vst.msk [vmem:[%s210_s26 + $0x10] sm:$0xff] %vm219_vm1, %v779_v1  ;;  %v1016_v3 = vpop.f32.mrb[7].mxu0 }
 0x2fd   : > { %v852_v4 = vpop.f32.mrb[6].mxu1 }
 0x2fe   : > { %859 = vst.msk [vmem:[%s210_s26 + $0x18] sm:$0xff] %vm219_vm1, %v852_v4  ;;  %v1021_v0 = vpop.f32.mrb[7].mxu1 }
 0x2ff PF: > { %s13_s12 = sadd.s32 1, %s1054_s12  }
 0x300   : > { %p10_p4 = scmp.ge.s32.totalorder %s13_s12, 4  }
 0x302   :  { %12 = sbr.rel (!%p10_p4) target bundleno = 1 (0x1), region = 68 }

// kernel: _lambda_.13
= control target key start
LH: loop header
LB: loop body
LE: loop exit
PB: predicated region body
PF: predicated region fallthrough
CT: control target
= control target key end

     0   :  { %vm36_vm0 = vcmask 261120   ;;  %s289_s1 = inlined_call_operand.vmem [shape: f32[32,32], index: 1, kind: input, shape index: {}]   ;;  %s290_s0 = inlined_call_operand.vmem [shape: f32[16,32], index: 0, kind: input, shape index: {}]   ;;  %s291_s2 = inlined_call_operand.vmem [shape: f32[1,32], index: 2, kind: input, shape index: {}]   ;;  %s292_s3 = inlined_call_operand.vmem [shape: f32[16,32], index: 3, kind: input, shape index: {}]   ;;  %s293_s4 = inlined_call_operand.vmem [shape: f32[1,32], index: 4, kind: input, shape index: {}]   ;;  %s294_s5 = inlined_call_operand.vmem [shape: f32[1,32], index: 5, kind: input, shape index: {}]   ;;  %s295_s6 = inlined_call_operand.vmem [shape: f32[16,32], index: 6, kind: output, shape index: {}]  }
   0x1   :  { %v25_v0 = vld [vmem:[%s289_s1] sm:$0xff]  ;;  %v26_v1 = vld [vmem:[%s289_s1 + $0x8] sm:$0xff]  ;;  %v27_v2 = vld [vmem:[%s289_s1 + $0x10] sm:$0xff] }
   0x2   :  { %v195_v3 = vpack.c.bf16 %v26_v1, %v25_v0  ;;  %v28_v4 = vld [vmem:[%s289_s1 + $0x18] sm:$0xff]  ;;  %v23_v5 = vld [vmem:[%s290_s0] sm:$0xff]  ;;  %v24_v7 = vld [vmem:[%s290_s0 + $0x8] sm:$0xff] }
   0x3   :  { %v199_v6 = vpack.c.bf16 %v28_v4, %v27_v2  ;;  %192 = vmatprep.mubr.msk.f32.mxu0 %vm36_vm0, %v23_v5  ;;  %v173_v8 = vld [vmem:[%s291_s2] ss:$0 sm:$0xff]  ;;  %v119_v14 = vld [vmem:[%s292_s3 + $0x8] sm:$0xff] }
   0x4   :  { %196 = vmatprep.subr.bf16.mxu0 %v195_v3  ;;  %v118_v11 = vld [vmem:[%s292_s3] sm:$0xff] }
   0x5   :  { %198 = vmatpush3.bf16.msra.mxu0 %v195_v3  ;;  %v176_v36 = vld [vmem:[%s293_s4] ss:$0 sm:$0xff] }
   0x6   :  { %200 = vmatprep.subr.bf16.mxu0 %v199_v6  ;;  %v177_v38 = vld [vmem:[%s294_s5] ss:$0 sm:$0xff] }
   0x9   :  { %202 = vmatpush3.bf16.msra.mxu0 %v199_v6 }
   0xc   :  { %193 = vmatmul.mubr.msk.f32.vlgmr.msra.gmra.mrb[0].mxu0 %vm36_vm0, %v24_v7 }
  0xdf   :  { %v194_v9 = vpop.f32.mrb[0].mxu0 }
  0xe0   :  { %v109_v10 = vpop.f32.mrb[1].mxu0  ;;  %v115_v12 = vadd.f32 %v194_v9, %v173_v8 }
  0xe1   :  { %v110_v13 = vadd.f32 %v173_v8, %v109_v10 }
  0xe2   :  { %v121_v17 = vadd.f32 %v119_v14, %v115_v12 }
  0xe3   :  { %v120_v15 = vadd.f32 %v118_v11, %v110_v13 }
  0xe4   :  { %v125_v18 = vsel %vm36_vm0, %v121_v17, 0.0 }
  0xe5   :  { %v122_v16 = vsel %vm36_vm0, %v120_v15, 0.0 }
  0xe6   :  { %123 = vadd.xlane.f32.xlu0 %v122_v16 }
  0xea   :  { %126 = vadd.xlane.f32.xlu0 %v125_v18 }
 0x173   :  { %v124_v19 = vpop.xlane.xlu0 %123 }
 0x174   :  { %v129_v20 = vmul.f32 0.03125, %v124_v19 }
 0x176   :  { %v131_v21 = vsub.f32 %v120_v15, %v129_v20 }
 0x177   :  { %v127_v22 = vpop.xlane.xlu0 %126 }
 0x178   :  { %v130_v23 = vmul.f32 0.03125, %v127_v22  ;;  %v133_v24 = vmul.f32 %v131_v21, %v131_v21 }
 0x17a   :  { %v132_v25 = vsub.f32 %v121_v17, %v130_v23  ;;  %v135_v26 = vsel %vm36_vm0, %v133_v24, 0.0 }
 0x17b   :  { %136 = vadd.xlane.f32.xlu1 %v135_v26 }
 0x17c   :  { %v134_v27 = vmul.f32 %v132_v25, %v132_v25 }
 0x17e   :  { %v138_v28 = vsel %vm36_vm0, %v134_v27, 0.0 }
 0x17f   :  { %139 = vadd.xlane.f32.xlu1 %v138_v28 }
 0x208   :  { %v137_v29 = vpop.xlane.xlu1 %136 }
 0x209   :  { %v141_v30 = vmul.f32 0.03125, %v137_v29 }
 0x20b   :  { %v143_v31 = vadd.f32 1e-05, %v141_v30 }
 0x20c   :  { %v140_v32 = vpop.xlane.xlu1 %139 }
 0x20d   :  { %203 = vrsqrt.f32 %v143_v31  ;;  %v142_v33 = vmul.f32 0.03125, %v140_v32 }
 0x20f   :  { %v144_v34 = vadd.f32 1e-05, %v142_v33 }
 0x211   :  { %205 = vrsqrt.f32 %v144_v34 }
 0x217   :  { %v204_v35 = vpop.eup %203 }
 0x218   :  { %v147_v37 = vmul.f32 %v204_v35, %v131_v21 }
 0x21a   :  { %v156_v39 = vmul.f32 %v176_v36, %v147_v37 }
 0x21b   :  { %v206_v40 = vpop.eup %205 }
 0x21c   :  { %v165_v41 = vadd.f32 %v177_v38, %v156_v39  ;;  %v148_v42 = vmul.f32 %v206_v40, %v132_v25 }
 0x21e   :  { %167 = vst.msk [vmem:[%s295_s6] sm:$0xff] %vm36_vm0, %v165_v41  ;;  %v157_v43 = vmul.f32 %v176_v36, %v148_v42 }
 0x220   :  { %v166_v44 = vadd.f32 %v177_v38, %v157_v43 }
 0x222   :  { %168 = vst.msk [vmem:[%s295_s6 + $0x8] sm:$0xff] %vm36_vm0, %v166_v44 }

// kernel: _lambda_.15
= control target key start
LH: loop header
LB: loop body
LE: loop exit
PB: predicated region body
PF: predicated region fallthrough
CT: control target
= control target key end

     0   :  { %s748_s21 = smov 0   ;;  %s824_s0 = inlined_call_operand.vmem [shape: f32[2,8,32], index: 0, kind: input, shape index: {}]   ;;  %s825_s1 = inlined_call_operand.vmem [shape: f32[32,32], index: 1, kind: input, shape index: {}]   ;;  %s826_s2 = inlined_call_operand.vmem [shape: f32[32,32], index: 2, kind: input, shape index: {}]   ;;  %s827_s3 = inlined_call_operand.vmem [shape: f32[32,32], index: 3, kind: input, shape index: {}]   ;;  %s828_s4 = inlined_call_operand.vmem [shape: f32[1,32], index: 4, kind: input, shape index: {}]   ;;  %s829_s5 = inlined_call_operand.vmem [shape: f32[2,8,32], index: 5, kind: output, shape index: {0}]   ;;  %s830_s6 = inlined_call_operand.vmem [shape: f32[2,2,32], index: 6, kind: output, shape index: {1}]  }
   0x1 LB: > { %s611_s22 = sadd.s32 4294967295, %s708_s21   ;;  %p615_p0 = scmp.ge.s32.totalorder %s708_s21, 1  ;;  %s708_s21 = sphi %s748_s21, %s17_s21  }
   0x2   : > { %p214_p1 = scmp.lt.s32.totalorder %s708_s21, 3 }
   0x4   : > { %p215_p2 = pnand %p615_p0, %p214_p1 }
   0x5   : > { %v272_v0 = vld [vmem:[%s826_s2] sm:$0xff] (!%p215_p2)  ;;  %v273_v1 = vld [vmem:[%s826_s2 + $0x8] sm:$0xff] (!%p215_p2)  ;;  %v710_v3 = vmov (!%p215_p2), 0.0|0.0   ;;  %v274_v6 = vld [vmem:[%s826_s2 + $0x10] sm:$0xff] (!%p215_p2)  ;;  %p246_p3 = scmp.lt.s32.totalorder (!%p215_p2), %s611_s22, 1  ;;  %vm711_vm0 = vmmov (!%p215_p2), 0  }
   0x6   : > { %218 = sbr.rel (%p215_p2) target bundleno = 258 (0x102), region = 40  ;;  %v268_v2 = vld [vmem:[%s825_s1] sm:$0xff] (!%p215_p2)  ;;  %673 = vmatprep.subr.bf16.mxu0 (!%p215_p2), %v710_v3  ;;  %v674_v4 = vpack.c.bf16 (!%p215_p2), %v273_v1, %v272_v0  ;;  %679 = vmatprep.subr.bf16.mxu1 (!%p215_p2), %v710_v3  ;;  %v269_v5 = vld [vmem:[%s825_s1 + $0x8] sm:$0xff] (!%p215_p2)  ;;  %v275_v7 = vld [vmem:[%s826_s2 + $0x18] sm:$0xff] (!%p215_p2)  ;;  %v712_v11 = vmov (!%p215_p2), 0.0   ;;  %vm276_vm1 = vcmask (!%p215_p2), 261120  }
   0x7   : > { %v680_v8 = vpack.c.bf16 (!%p215_p2), %v269_v5, %v268_v2  ;;  %v270_v9 = vld [vmem:[%s825_s1 + $0x10] sm:$0xff] (!%p215_p2)  ;;  %v271_v10 = vld [vmem:[%s825_s1 + $0x18] sm:$0xff] (!%p215_p2)  ;;  %648 = vmatprep.mubr.msk.f32.mxu0 (!%p215_p2), %vm711_vm0, %v712_v11  ;;  %659 = vmatprep.mubr.msk.f32.mxu1 (!%p215_p2), %vm711_vm0, %v712_v11  ;;  %v677_v12 = vpack.c.bf16 (!%p215_p2), %v275_v7, %v274_v6  ;;  %v422_v14 = vld [vmem:[%s827_s3] sm:$0xff] (!%p215_p2)  ;;  %vm262_vm2 = vcmask (!%p215_p2), 1040384   ;;  %vm525_vm3 = vcmask (!%p215_p2), 254976  }
   0x8   : > { %675 = vmatpush3.bf16.msra.mxu0 (!%p215_p2), %v674_v4  ;;  %v683_v13 = vpack.c.bf16 (!%p215_p2), %v271_v10, %v270_v9  ;;  %v423_v15 = vld [vmem:[%s827_s3 + $0x8] sm:$0xff] (!%p215_p2)  ;;  %v424_v19 = vld [vmem:[%s827_s3 + $0x10] sm:$0xff] (!%p215_p2)  ;;  %v425_v20 = vld [vmem:[%s827_s3 + $0x18] sm:$0xff] (!%p215_p2) }
   0x9   : > { %681 = vmatpush3.bf16.msra.mxu1 (!%p215_p2), %v680_v8  ;;  %676 = vmatprep.subr.bf16.mxu0 (!%p215_p2), %v710_v3  ;;  %v686_v17 = vpack.c.bf16 (!%p215_p2), %v423_v15, %v422_v14  ;;  %v689_v21 = vpack.c.bf16 (!%p215_p2), %v425_v20, %v424_v19  ;;  %v622_v29 = vld [vmem:[%s828_s4] ss:$0 sm:$0xff] (!%p215_p2) }
   0xa   : > { %682 = vmatprep.subr.bf16.mxu1 (!%p215_p2), %v710_v3 }
   0xc   : > { %678 = vmatpush3.bf16.msra.mxu0 (!%p215_p2), %v677_v12 }
   0xd   : > { %s832_s22 = smov (!%p246_p3, %s611_s22), 1  ;;  %684 = vmatpush3.bf16.msra.mxu1 %v683_v13  ;;  %685 = vmatprep.subr.bf16.mxu0 %v710_v3 }
   0xe   : > { %s616_s19 = sshll.u32 %s832_s22, 3  ;;  %s618_s10 = sshll.u32 %s832_s22, 1 }
   0xf   : > { %s249_s24 = scalar_lea.vmem %s824_s0, %s616_s19  ;;  %s253_s9 = scalar_lea.vmem %s829_s5, %s616_s19 }
  0x10   : > { %v258_v16 = vld [vmem:[%s249_s24] sm:$0xff]  ;;  %s257_s13 = scalar_lea.vmem %s830_s6, %s618_s10 }
  0x11   : > { %v260_v18 = vrot.slane %v258_v16, 7  ;;  %649 = vmatmul.mubr.msk.f32.vlgmr.msra.gmra.mrb[0].mxu0 %vm276_vm1, %v258_v16  ;;  %v264_v22 = vrot.slane %v258_v16, 1 }
  0x12   : > { %687 = vmatpush3.bf16.msra.mxu0 %v686_v17  ;;  %670 = vmatprep.mubr.msk.f32.mxu0 %vm711_vm0, %v712_v11 }
  0x13   : > { %660 = vmatmul.mubr.msk.f32.vlgmr.msra.gmra.mrb[0].mxu1 %vm276_vm1, %v260_v18  ;;  %688 = vmatprep.subr.bf16.mxu0 %v710_v3 }
  0x16   : > { %690 = vmatpush3.bf16.msra.mxu0 %v689_v21 }
  0x19   : > { %671 = vmatmul.mubr.msk.f32.vlgmr.msra.gmra.mrb[2].mxu0 %vm276_vm1, %v264_v22 }
  0xe4   : > { %v345_v23 = vpop.f32.mrb[0].mxu0 }
  0xe5   : > { %v650_v24 = vpop.f32.mrb[1].mxu0 }
  0xe6   : > { %v418_v25 = vpop.f32.mrb[0].mxu1 }
  0xe7   : > { %v419_v26 = vadd.f32 %v418_v25, %v345_v23  ;;  %v661_v27 = vpop.f32.mrb[1].mxu1 }
  0xec   : > { %v495_v28 = vpop.f32.mrb[2].mxu0 }
  0xed   : > { %v499_v30 = vadd.f32 %v495_v28, %v419_v26  ;;  %v672_v31 = vpop.f32.mrb[3].mxu0 }
  0xef   : > { %v507_v32 = vadd.f32 %v622_v29, %v499_v30 }
  0xf1   : > { %508 = vst.msk [vmem:[%s253_s9] sm:$0xff] %vm276_vm1, %v507_v32  ;;  %v509_v33 = vsel %vm276_vm1, %v507_v32, 0.0  ;;  %v516_v34 = vmul.f32 %v507_v32, %v507_v32 }
  0xf2   : > { %v510_v35 = vrot.slane %v509_v33, 4 }
  0xf3   : > { %v517_v36 = vsel %vm276_vm1, %v516_v34, 0.0 }
  0xf4   : > { %v511_v37 = vadd.f32 %v510_v35, %v509_v33  ;;  %v518_v38 = vrot.slane %v517_v36, 4 }
  0xf6   : > { %v512_v39 = vrot.slane %v511_v37, 2  ;;  %v519_v40 = vadd.f32 %v518_v38, %v517_v36 }
  0xf8   : > { %v513_v41 = vadd.f32 %v512_v39, %v511_v37  ;;  %v520_v42 = vrot.slane %v519_v40, 2 }
  0xfa   : > { %v514_v43 = vrot.slane %v513_v41, 1  ;;  %v521_v44 = vadd.f32 %v520_v42, %v519_v40 }
  0xfc   : > { %v522_v45 = vrot.slane %v521_v44, 1  ;;  %v515_v46 = vadd.f32 %v514_v43, %v513_v41 }
  0xfe   : > { %v523_v47 = vadd.f32 %v522_v45, %v521_v44 }
 0x100   : > { %v524_v48 = vsel %vm262_vm2, %v515_v46, %v523_v47 }
 0x101   : > { %526 = vst.msk [vmem:[%s257_s13] sm:$0x3] %vm525_vm3, %v524_v48 }
 0x102 PF: > { %s17_s21 = sadd.s32 1, %s708_s21  }
 0x103   : > { %p14_p4 = scmp.ge.s32.totalorder %s17_s21, 4  }
 0x105   :  { %16 = sbr.rel (!%p14_p4) target bundleno = 1 (0x1), region = 82 }

// kernel: _lambda_.14
= control target key start
LH: loop header
LB: loop body
LE: loop exit
PB: predicated region body
PF: predicated region fallthrough
CT: control target
= control target key end

     0   :  { %vm39_vm0 = vcmask 261120   ;;  %vm138_vm1 = vcmask 523264   ;;  %s463_s1 = inlined_call_operand.vmem [shape: f32[32,64], index: 1, kind: input, shape index: {}]   ;;  %s464_s0 = inlined_call_operand.vmem [shape: f32[16,32], index: 0, kind: input, shape index: {}]   ;;  %s465_s3 = inlined_call_operand.vmem [shape: f32[64,32], index: 3, kind: input, shape index: {}]   ;;  %s466_s2 = inlined_call_operand.vmem [shape: f32[1,64], index: 2, kind: input, shape index: {}]   ;;  %s467_s4 = inlined_call_operand.vmem [shape: f32[1,32], index: 4, kind: input, shape index: {}]   ;;  %s468_s5 = inlined_call_operand.vmem [shape: f32[1,32], index: 5, kind: input, shape index: {}]   ;;  %s469_s6 = inlined_call_operand.vmem [shape: f32[1,32], index: 6, kind: input, shape index: {}]   ;;  %s470_s7 = inlined_call_operand.vmem [shape: f32[16,32], index: 7, kind: output, shape index: {}]  }
   0x1   :  { %v28_v0 = vld [vmem:[%s463_s1] sm:$0xff]  ;;  %v29_v1 = vld [vmem:[%s463_s1 + $0x8] sm:$0xff]  ;;  %v30_v2 = vld [vmem:[%s463_s1 + $0x10] sm:$0xff] }
   0x2   :  { %v327_v3 = vpack.c.bf16 %v29_v1, %v28_v0  ;;  %v31_v4 = vld [vmem:[%s463_s1 + $0x18] sm:$0xff]  ;;  %v26_v5 = vld [vmem:[%s464_s0] sm:$0xff]  ;;  %v124_v8 = vld [vmem:[%s465_s3 + $0x8] sm:$0xff] }
   0x3   :  { %v331_v6 = vpack.c.bf16 %v31_v4, %v30_v2  ;;  %305 = vmatprep.mubr.msk.f32.mxu0 %vm39_vm0, %v26_v5  ;;  %v123_v7 = vld [vmem:[%s465_s3] sm:$0xff]  ;;  %v125_v9 = vld [vmem:[%s465_s3 + $0x10] sm:$0xff]  ;;  %v126_v11 = vld [vmem:[%s465_s3 + $0x18] sm:$0xff] }
   0x4   :  { %328 = vmatprep.subr.bf16.mxu0 %v327_v3  ;;  %v335_v10 = vpack.c.bf16 %v124_v8, %v123_v7  ;;  %v339_v12 = vpack.c.bf16 %v126_v11, %v125_v9  ;;  %v127_v13 = vld [vmem:[%s465_s3 + $0x20] sm:$0xff]  ;;  %v128_v14 = vld [vmem:[%s465_s3 + $0x28] sm:$0xff]  ;;  %v129_v17 = vld [vmem:[%s465_s3 + $0x30] sm:$0xff] }
   0x5   :  { %330 = vmatpush3.bf16.msra.mxu0 %v327_v3  ;;  %v343_v15 = vpack.c.bf16 %v128_v14, %v127_v13  ;;  %v27_v16 = vld [vmem:[%s464_s0 + $0x8] sm:$0xff]  ;;  %v130_v18 = vld [vmem:[%s465_s3 + $0x38] sm:$0xff]  ;;  %v273_v20 = vld [vmem:[%s466_s2] ss:$0 sm:$0xff] }
   0x6   :  { %332 = vmatprep.subr.bf16.mxu0 %v331_v6  ;;  %336 = vmatprep.subr.bf16.mxu1 %v335_v10  ;;  %v347_v19 = vpack.c.bf16 %v130_v18, %v129_v17  ;;  %v276_v27 = vld [vmem:[%s467_s4] ss:$0 sm:$0xff] }
   0x7   :  { %338 = vmatpush3.bf16.msra.mxu1 %v335_v10  ;;  %v279_v53 = vld [vmem:[%s468_s5] ss:$0 sm:$0xff] }
   0x8   :  { %340 = vmatprep.subr.bf16.mxu1 %v339_v12  ;;  %v280_v55 = vld [vmem:[%s469_s6] ss:$0 sm:$0xff] }
   0x9   :  { %334 = vmatpush3.bf16.msra.mxu0 %v331_v6 }
   0xb   :  { %342 = vmatpush3.bf16.msra.mxu1 %v339_v12 }
   0xc   :  { %306 = vmatmul.mubr.msk.f32.vlgmr.msra.gmra.mrb[0].mxu0 %vm39_vm0, %v27_v16  ;;  %344 = vmatprep.subr.bf16.mxu1 %v343_v15 }
   0xf   :  { %346 = vmatpush3.bf16.msra.mxu1 %v343_v15 }
  0x10   :  { %348 = vmatprep.subr.bf16.mxu1 %v347_v19 }
  0x13   :  { %350 = vmatpush3.bf16.msra.mxu1 %v347_v19 }
  0xdf   :  { %v307_v21 = vpop.f32.mrb[0].mxu0 }
  0xe0   :  { %v118_v22 = vadd.f32 %v307_v21, %v273_v20  ;;  %v112_v23 = vpop.f32.mrb[1].mxu0 }
  0xe1   :  { %v113_v24 = vadd.f32 %v273_v20, %v112_v23 }
  0xe2   :  { %v122_v26 = vmax.f32 %v118_v22, 0.0 }
  0xe3   :  { %v121_v25 = vmax.f32 %v113_v24, 0.0 }
  0xe5   :  { %324 = vmatprep.mubr.msk.f32.mxu1 %vm138_vm1, %v121_v25 }
  0xe6   :  { %325 = vmatmul.mubr.msk.f32.vlgmr.msra.gmra.mrb[0].mxu1 %vm138_vm1, %v122_v26 }
 0x1b9   :  { %v326_v28 = vpop.f32.mrb[0].mxu1 }
 0x1ba   :  { %v211_v29 = vpop.f32.mrb[1].mxu1  ;;  %v217_v30 = vadd.f32 %v326_v28, %v276_v27 }
 0x1bb   :  { %v212_v31 = vadd.f32 %v276_v27, %v211_v29 }
 0x1bc   :  { %v221_v34 = vadd.f32 %v217_v30, %v27_v16 }
 0x1bd   :  { %v220_v32 = vadd.f32 %v212_v31, %v26_v5 }
 0x1be   :  { %v225_v35 = vsel %vm39_vm0, %v221_v34, 0.0 }
 0x1bf   :  { %v222_v33 = vsel %vm39_vm0, %v220_v32, 0.0 }
 0x1c0   :  { %223 = vadd.xlane.f32.xlu0 %v222_v33 }
 0x1c4   :  { %226 = vadd.xlane.f32.xlu0 %v225_v35 }
 0x24d   :  { %v224_v36 = vpop.xlane.xlu0 %223 }
 0x24e   :  { %v229_v37 = vmul.f32 0.03125, %v224_v36 }
 0x250   :  { %v231_v38 = vsub.f32 %v220_v32, %v229_v37 }
 0x251   :  { %v227_v39 = vpop.xlane.xlu0 %226 }
 0x252   :  { %v230_v40 = vmul.f32 0.03125, %v227_v39  ;;  %v233_v41 = vmul.f32 %v231_v38, %v231_v38 }
 0x254   :  { %v232_v42 = vsub.f32 %v221_v34, %v230_v40  ;;  %v235_v43 = vsel %vm39_vm0, %v233_v41, 0.0 }
 0x255   :  { %236 = vadd.xlane.f32.xlu1 %v235_v43 }
 0x256   :  { %v234_v44 = vmul.f32 %v232_v42, %v232_v42 }
 0x258   :  { %v238_v45 = vsel %vm39_vm0, %v234_v44, 0.0 }
 0x259   :  { %239 = vadd.xlane.f32.xlu1 %v238_v45 }
 0x2e2   :  { %v237_v46 = vpop.xlane.xlu1 %236 }
 0x2e3   :  { %v241_v47 = vmul.f32 0.03125, %v237_v46 }
 0x2e5   :  { %v243_v48 = vadd.f32 1e-05, %v241_v47 }
 0x2e6   :  { %v240_v49 = vpop.xlane.xlu1 %239 }
 0x2e7   :  { %351 = vrsqrt.f32 %v243_v48  ;;  %v242_v50 = vmul.f32 0.03125, %v240_v49 }
 0x2e9   :  { %v244_v51 = vadd.f32 1e-05, %v242_v50 }
 0x2eb   :  { %353 = vrsqrt.f32 %v244_v51 }
 0x2f1   :  { %v352_v52 = vpop.eup %351 }
 0x2f2   :  { %v247_v54 = vmul.f32 %v352_v52, %v231_v38 }
 0x2f4   :  { %v256_v56 = vmul.f32 %v279_v53, %v247_v54 }
 0x2f5   :  { %v354_v57 = vpop.eup %353 }
 0x2f6   :  { %v265_v58 = vadd.f32 %v280_v55, %v256_v56  ;;  %v248_v59 = vmul.f32 %v354_v57, %v232_v42 }
 0x2f8   :  { %267 = vst.msk [vmem:[%s470_s7] sm:$0xff] %vm39_vm0, %v265_v58  ;;  %v257_v60 = vmul.f32 %v279_v53, %v248_v59 }
 0x2fa   :  { %v266_v61 = vadd.f32 %v280_v55, %v257_v60 }
 0x2fc   :  { %268 = vst.msk [vmem:[%s470_s7 + $0x8] sm:$0xff] %vm39_vm0, %v266_v61 }

// kernel: _lambda_.16
= control target key start
LH: loop header
LB: loop body
LE: loop exit
PB: predicated region body
PF: predicated region fallthrough
CT: control target
= control target key end

     0   :  { %s375_s15 = smov 0   ;;  %s406_s0 = inlined_call_operand.vmem [shape: f32[2,4,32], index: 0, kind: input, shape index: {}]   ;;  %s407_s1 = inlined_call_operand.vmem [shape: f32[2,4,32], index: 1, kind: input, shape index: {}]   ;;  %s408_s2 = inlined_call_operand.vmem [shape: f32[1,32], index: 2, kind: input, shape index: {}]   ;;  %s409_s3 = inlined_call_operand.vmem [shape: f32[1,32], index: 3, kind: input, shape index: {}]   ;;  %s410_s4 = inlined_call_operand.vmem [shape: f32[2,4,32], index: 4, kind: output, shape index: {}]  }
   0x1 LB: > { %s316_s16 = sadd.s32 4294967295, %s348_s15   ;;  %p320_p0 = scmp.ge.s32.totalorder %s348_s15, 1  ;;  %s348_s15 = sphi %s375_s15, %s14_s15  }
   0x2   : > { %p170_p1 = scmp.lt.s32.totalorder %s348_s15, 3 }
   0x4   : > { %p171_p2 = pnand %p320_p0, %p170_p1 }
   0x5   : > { %p198_p3 = scmp.lt.s32.totalorder (!%p171_p2), %s316_s16, 1  ;;  %v324_v0 = vld [vmem:[%s408_s2] ss:$0 sm:$0xff] (!%p171_p2)  ;;  %vm245_vm2 = vcmask (!%p171_p2), 1040384   ;;  %vm249_vm3 = vcmask (!%p171_p2), 257024  }
   0x6   : > { %174 = sbr.rel (%p171_p2) target bundleno = 48 (0x30), region = 36  ;;  %v325_v1 = vld [vmem:[%s409_s3] ss:$0 sm:$0xff] (!%p171_p2) }
   0xd   : > { %s412_s16 = smov (!%p198_p3, %s316_s16), 1 }
   0xe   : > { %s383_s17 = sshll.u32 %s412_s16, 2 }
   0xf   : > { %s201_s22 = scalar_lea.vmem %s406_s0, %s383_s17  ;;  %s205_s25 = scalar_lea.vmem %s407_s1, %s383_s17 }
  0x10   : > { %v212_v2 = vld [vmem:[%s201_s22] sm:$0xf]  ;;  %s209_s30 = scalar_lea.vmem %s410_s4, %s383_s17 }
  0x11   : > { %v233_v3 = vld [vmem:[%s205_s25] sm:$0xf]  ;;  %v219_v4 = vmul.f32 %v324_v0, %v212_v2 }
  0x12   : > { %v234_v5 = vmul.f32 %v324_v0, %v233_v3 }
  0x13   : > { %v226_v6 = vadd.f32 %v325_v1, %v219_v4 }
  0x14   : > { %v235_v7 = vadd.f32 %v325_v1, %v234_v5 }
  0x15   : > { %v228_v8 = vmin.f32 %v226_v6, 0.0  ;;  %vm227_vm1 = vcmp.gt.f32.partialorder %v226_v6, 0.0 }
  0x16   : > { %v237_v9 = vmin.f32 %v235_v7, 0.0  ;;  %vm236_vm0 = vcmp.gt.f32.partialorder %v235_v7, 0.0 }
  0x17   : > { %v229_v10 = vmul.f32 1.442695, %v228_v8 }
  0x18   : > { %v238_v11 = vmul.f32 1.442695, %v237_v9 }
  0x19   : > { %338 = vpow2.f32 %v229_v10 }
  0x1a   : > { %340 = vpow2.f32 %v238_v11 }
  0x23   : > { %v339_v12 = vpop.eup %338 }
  0x24   : > { %v341_v13 = vpop.eup %340  ;;  %v326_v14 = vadd.f32 -1.0, %v339_v12 }
  0x25   : > { %v327_v15 = vadd.f32 -1.0, %v341_v13 }
  0x26   : > { %v232_v17 = vsel %vm227_vm1, %v226_v6, %v326_v14 }
  0x27   : > { %v241_v16 = vsel %vm236_vm0, %v235_v7, %v327_v15 }
  0x28   : > { %v243_v18 = vrot.slane %v241_v16, 7 }
  0x2a   : > { %v246_v19 = vsel %vm245_vm2, -inf, %v243_v18 }
  0x2b   : > { %v247_v20 = vmax.f32 %v246_v19, %v232_v17 }
  0x2d   : > { %v248_v21 = vmax.f32 %v247_v20, %v241_v16 }
  0x2f   : > { %250 = vst.msk [vmem:[%s209_s30] sm:$0xf] %vm249_vm3, %v248_v21 }
  0x30 PF: > { %s14_s15 = sadd.s32 1, %s348_s15  }
  0x31   : > { %p11_p4 = scmp.ge.s32.totalorder %s14_s15, 4  }
  0x33   :  { %13 = sbr.rel (!%p11_p4) target bundleno = 1 (0x1), region = 69 }

// kernel: _lambda_.17
= control target key start
LH: loop header
LB: loop body
LE: loop exit
PB: predicated region body
PF: predicated region fallthrough
CT: control target
= control target key end

     0   :  { %v133_v0 = vmov 0.0|0.0   ;;  %vm134_vm0 = vmmov 0   ;;  %v135_v4 = vmov 0.0   ;;  %vm26_vm1 = vcmask 261120   ;;  %s177_s1 = inlined_call_operand.vmem [shape: f32[32,96], index: 1, kind: input, shape index: {}]   ;;  %s178_s0 = inlined_call_operand.vmem [shape: f32[8,32], index: 0, kind: input, shape index: {}]   ;;  %s179_s2 = inlined_call_operand.vmem [shape: f32[1,96], index: 2, kind: input, shape index: {}]   ;;  %s180_s3 = inlined_call_operand.vmem [shape: f32[8,96], index: 3, kind: output, shape index: {}]  }
   0x1   :  { %124 = vmatprep.subr.bf16.mxu0 %v133_v0  ;;  %v15_v1 = vld [vmem:[%s177_s1] sm:$0xff]  ;;  %v16_v2 = vld [vmem:[%s177_s1 + $0x8] sm:$0xff]  ;;  %v17_v3 = vld [vmem:[%s177_s1 + $0x10] sm:$0xff]  ;;  %121 = vmatprep.mubr.msk.f32.mxu0 %vm134_vm0, %v135_v4  ;;  %vm100_vm2 = vcmask 785408  }
   0x2   :  { %v125_v5 = vpack.c.bf16 %v16_v2, %v15_v1  ;;  %v18_v6 = vld [vmem:[%s177_s1 + $0x18] sm:$0xff]  ;;  %v14_v8 = vld [vmem:[%s178_s0] sm:$0xff] }
   0x3   :  { %v128_v7 = vpack.c.bf16 %v18_v6, %v17_v3  ;;  %v106_v9 = vld [vmem:[%s179_s2] ss:$0 sm:$0xff] }
   0x4   :  { %126 = vmatpush3.bf16.msra.mxu0 %v125_v5 }
   0x5   :  { %127 = vmatprep.subr.bf16.mxu0 %v133_v0 }
   0x8   :  { %129 = vmatpush3.bf16.msra.mxu0 %v128_v7 }
   0xb   :  { %122 = vmatmul.mubr.msk.f32.vlgmr.msra.gmra.mrb[0].mxu0 %vm26_vm1, %v14_v8 }
  0xde   :  { %v96_v10 = vpop.f32.mrb[0].mxu0 }
  0xdf   :  { %v97_v11 = vadd.f32 %v106_v9, %v96_v10  ;;  %v123_v12 = vpop.f32.mrb[1].mxu0 }
  0xe1   :  { %101 = vst.msk [vmem:[%s180_s3] sm:$0xff] %vm100_vm2, %v97_v11 }

// kernel: _lambda_.18
= control target key start
LH: loop header
LB: loop body
LE: loop exit
PB: predicated region body
PF: predicated region fallthrough
CT: control target
= control target key end

     0   :  { %s1098_s12 = smov 0   ;;  %s1170_s0 = inlined_call_operand.vmem [shape: f32[2,4,4,8], index: 0, kind: input, shape index: {}]   ;;  %s1171_s1 = inlined_call_operand.vmem [shape: f32[2,4,8,4], index: 1, kind: input, shape index: {}]   ;;  %s1172_s2 = inlined_call_operand.vmem [shape: f32[2,4,4,8], index: 2, kind: input, shape index: {}]   ;;  %s1173_s3 = inlined_call_operand.vmem [shape: f32[2,4,4,8], index: 3, kind: output, shape index: {}]  }
   0x1 LB: > { %s955_s13 = sadd.s32 4294967295, %s1074_s12   ;;  %p959_p0 = scmp.ge.s32.totalorder %s1074_s12, 1  ;;  %s1074_s12 = sphi %s1098_s12, %s13_s12  }
   0x2   : > { %p157_p1 = scmp.lt.s32.totalorder %s1074_s12, 3 }
   0x4   : > { %p158_p2 = pnand %p959_p0, %p157_p1 }
   0x5   : > { %p191_p3 = scmp.lt.s32.totalorder (!%p158_p2), %s955_s13, 1  ;;  %v1076_v0 = vmov (!%p158_p2), 0.0   ;;  %vm1077_vm0 = vmmov (!%p158_p2), 0   ;;  %vm219_vm1 = vcmask (!%p158_p2), 64512   ;;  %vm516_vm2 = vcmask (!%p158_p2), 27648  }
   0x6   : > { %161 = sbr.rel (%p158_p2) target bundleno = 767 (0x2ff), region = 32  ;;  %1002 = vmatprep.subr.mxu0 (!%p158_p2), %v1076_v0  ;;  %1004 = vmatprep.mubr.msk.f32.mxu0 (!%p158_p2), %vm1077_vm0, %v1076_v0  ;;  %vm569_vm3 = vcmask (!%p158_p2), 1043456   ;;  %vm565_vm4 = vcmask (!%p158_p2), 31744   ;;  %vm871_vm5 = vcmask (!%p158_p2), 60416  }
   0x7   : > { %1007 = vmatprep.subr.mxu1 (!%p158_p2), %v1076_v0  ;;  %1009 = vmatprep.mubr.msk.f32.mxu1 (!%p158_p2), %vm1077_vm0, %v1076_v0 }
   0xd   : > { %s1175_s13 = smov (!%p191_p3, %s955_s13), 1 }
   0xe   : > { %s1112_s14 = sshll.u32 %s1175_s13, 4  ;;  %s983_s15 = sshll.u32 %s1175_s13, 5 }
   0xf   : > { %s200_s18 = scalar_lea.vmem %s1171_s1, %s983_s15  ;;  %s195_s21 = scalar_lea.vmem %s1170_s0, %s1112_s14 }
  0x10   : > { %v215_v1 = vld [vmem:[%s200_s18] sm:$0xff]  ;;  %v217_v3 = vld [vmem:[%s200_s18 + $0x10] sm:$0xff]  ;;  %v216_v4 = vld [vmem:[%s200_s18 + $0x8] sm:$0xff]  ;;  %s205_s24 = scalar_lea.vmem %s1172_s2, %s1112_s14  ;;  %s210_s27 = scalar_lea.vmem %s1173_s3, %s1112_s14 }
  0x11   : > { %v211_v2 = vld [vmem:[%s195_s21] sm:$0xf]  ;;  %1003 = vmatpush3.msra.mxu0 %v215_v1  ;;  %v212_v5 = vld [vmem:[%s195_s21 + $0x4] sm:$0xf]  ;;  %1008 = vmatpush3.msra.mxu1 %v216_v4  ;;  %v213_v6 = vld [vmem:[%s195_s21 + $0x8] sm:$0xf] }
  0x12   : > { %1005 = vmatmul.mubr.msk.f32.vlgmr.msra.gmra.mrb[0].mxu0 %vm219_vm1, %v211_v2  ;;  %1012 = vmatprep.subr.mxu0 %v1076_v0  ;;  %v218_v7 = vld [vmem:[%s200_s18 + $0x18] sm:$0xff]  ;;  %v214_v8 = vld [vmem:[%s195_s21 + $0xc] sm:$0xf]  ;;  %v561_v45 = vld [vmem:[%s205_s24] sm:$0xf] }
  0x13   : > { %1013 = vmatpush3.msra.mxu0 %v217_v3  ;;  %1014 = vmatprep.mubr.msk.f32.mxu0 %vm1077_vm0, %v1076_v0  ;;  %v562_v46 = vld [vmem:[%s205_s24 + $0x4] sm:$0xf]  ;;  %v563_v53 = vld [vmem:[%s205_s24 + $0x8] sm:$0xf]  ;;  %v564_v57 = vld [vmem:[%s205_s24 + $0xc] sm:$0xf] }
  0x14   : > { %1010 = vmatmul.mubr.msk.f32.vlgmr.msra.gmra.mrb[0].mxu1 %vm219_vm1, %v212_v5  ;;  %1017 = vmatprep.subr.mxu1 %v1076_v0 }
  0x15   : > { %1019 = vmatprep.mubr.msk.f32.mxu1 %vm1077_vm0, %v1076_v0  ;;  %1018 = vmatpush3.msra.mxu1 %v218_v7 }
  0x16   : > { %1015 = vmatmul.mubr.msk.f32.vlgmr.msra.gmra.mrb[2].mxu0 %vm219_vm1, %v213_v6  ;;  %1022 = vmatprep.subr.mxu0 %v1076_v0 }
  0x17   : > { %1024 = vmatprep.mubr.msk.f32.mxu0 %vm1077_vm0, %v1076_v0  ;;  %1027 = vmatprep.subr.mxu1 %v1076_v0 }
  0x18   : > { %1020 = vmatmul.mubr.msk.f32.vlgmr.msra.gmra.mrb[2].mxu1 %vm219_vm1, %v214_v8  ;;  %1023 = vmatpush3.msk.msra.mxu0 %vm569_vm3, %v561_v45 }
  0x19   : > { %1029 = vmatprep.mubr.msk.f32.mxu1 %vm1077_vm0, %v1076_v0  ;;  %1032 = vmatprep.subr.mxu0 %v1076_v0 }
  0x1a   : > { %1028 = vmatpush3.msk.msra.mxu1 %vm569_vm3, %v562_v46 }
  0x1b   : > { %1037 = vmatprep.subr.mxu1 %v1076_v0 }
  0xe5   : > { %v289_v9 = vpop.f32.mrb[0].mxu0 }
  0xe6   : > { %v512_v10 = vmul.f32 0.35355338, %v289_v9  ;;  %v1006_v11 = vpop.f32.mrb[1].mxu0 }
  0xe7   : > { %v362_v12 = vpop.f32.mrb[0].mxu1 }
  0xe8   : > { %v513_v13 = vmul.f32 0.35355338, %v362_v12  ;;  %v517_v14 = vsel %vm516_vm2, %v512_v10, -inf  ;;  %v1011_v15 = vpop.f32.mrb[1].mxu1 }
  0xe9   : > { %518 = vmax.xlane.f32.xlu0 %v517_v14  ;;  %v435_v16 = vpop.f32.mrb[2].mxu0 }
  0xea   : > { %v514_v17 = vmul.f32 0.35355338, %v435_v16  ;;  %v1016_v18 = vpop.f32.mrb[3].mxu0  ;;  %v520_v19 = vsel %vm516_vm2, %v513_v13, -inf }
  0xeb   : > { %v508_v20 = vpop.f32.mrb[2].mxu1 }
  0xec   : > { %v515_v21 = vmul.f32 0.35355338, %v508_v20  ;;  %v523_v22 = vsel %vm516_vm2, %v514_v17, -inf  ;;  %v1021_v23 = vpop.f32.mrb[3].mxu1 }
  0xed   : > { %521 = vmax.xlane.f32.xlu0 %v520_v19  ;;  %524 = vmax.xlane.f32.xlu1 %v523_v22 }
  0xee   : > { %v526_v24 = vsel %vm516_vm2, %v515_v21, -inf }
  0xf1   : > { %527 = vmax.xlane.f32.xlu1 %v526_v24 }
 0x176   : > { %v519_v25 = vpop.xlane.xlu0 %518 }
 0x177   : > { %v529_v26 = vsub.f32 %v512_v10, %v519_v25 }
 0x179   : > { %v533_v27 = vmul.f32 1.442695, %v529_v26 }
 0x17a   : > { %v522_v28 = vpop.xlane.xlu0 %521  ;;  %v525_v29 = vpop.xlane.xlu1 %524 }
 0x17b   : > { %1052 = vpow2.f32 %v533_v27  ;;  %v530_v30 = vsub.f32 %v513_v13, %v522_v28  ;;  %v531_v31 = vsub.f32 %v514_v17, %v525_v29 }
 0x17d   : > { %v535_v32 = vmul.f32 1.442695, %v530_v30  ;;  %v537_v33 = vmul.f32 1.442695, %v531_v31 }
 0x17e   : > { %v528_v34 = vpop.xlane.xlu1 %527 }
 0x17f   : > { %1054 = vpow2.f32 %v535_v32  ;;  %v532_v35 = vsub.f32 %v515_v21, %v528_v34 }
 0x180   : > { %1056 = vpow2.f32 %v537_v33 }
 0x181   : > { %v539_v36 = vmul.f32 1.442695, %v532_v35 }
 0x183   : > { %1058 = vpow2.f32 %v539_v36 }
 0x185   : > { %v1053_v37 = vpop.eup %1052 }
 0x186   : > { %v541_v38 = vsel %vm516_vm2, %v1053_v37, 0.0 }
 0x187   : > { %542 = vadd.xlane.f32.xlu0 %v541_v38 }
 0x189   : > { %v1055_v39 = vpop.eup %1054 }
 0x18a   : > { %v1057_v40 = vpop.eup %1056  ;;  %v544_v41 = vsel %vm516_vm2, %v1055_v39, 0.0 }
 0x18b   : > { %545 = vadd.xlane.f32.xlu1 %v544_v41  ;;  %v547_v42 = vsel %vm516_vm2, %v1057_v40, 0.0 }
 0x18c   : > { %548 = vadd.xlane.f32.xlu0 %v547_v42 }
 0x18d   : > { %v1059_v43 = vpop.eup %1058 }
 0x18e   : > { %v550_v44 = vsel %vm516_vm2, %v1059_v43, 0.0 }
 0x18f   : > { %551 = vadd.xlane.f32.xlu1 %v550_v44 }
 0x214   : > { %v543_v47 = vpop.xlane.xlu0 %542 }
 0x215   : > { %1060 = vrcp.f32 %v543_v47 }
 0x218   : > { %v546_v48 = vpop.xlane.xlu1 %545 }
 0x219   : > { %v549_v49 = vpop.xlane.xlu0 %548  ;;  %1062 = vrcp.f32 %v546_v48 }
 0x21a   : > { %1064 = vrcp.f32 %v549_v49 }
 0x21c   : > { %v552_v50 = vpop.xlane.xlu1 %551 }
 0x21d   : > { %1066 = vrcp.f32 %v552_v50 }
 0x21f   : > { %v1061_v51 = vpop.eup %1060 }
 0x220   : > { %v557_v52 = vmul.f32 %v1061_v51, %v1053_v37 }
 0x222   : > { %1025 = vmatmul.mubr.msk.f32.vlgmr.msra.gmra.mrb[4].mxu0 %vm565_vm4, %v557_v52 }
 0x223   : > { %v1063_v54 = vpop.eup %1062  ;;  %1033 = vmatpush3.msk.msra.mxu0 %vm569_vm3, %v563_v53  ;;  %1034 = vmatprep.mubr.msk.f32.mxu0 %vm1077_vm0, %v1076_v0 }
 0x224   : > { %v1065_v55 = vpop.eup %1064  ;;  %v558_v56 = vmul.f32 %v1063_v54, %v1055_v39 }
 0x225   : > { %v559_v58 = vmul.f32 %v1065_v55, %v1057_v40 }
 0x226   : > { %1030 = vmatmul.mubr.msk.f32.vlgmr.msra.gmra.mrb[4].mxu1 %vm565_vm4, %v558_v56 }
 0x227   : > { %v1067_v59 = vpop.eup %1066  ;;  %1035 = vmatmul.mubr.msk.f32.vlgmr.msra.gmra.mrb[6].mxu0 %vm565_vm4, %v559_v58  ;;  %1038 = vmatpush3.msk.msra.mxu1 %vm569_vm3, %v564_v57 }
 0x228   : > { %v560_v60 = vmul.f32 %v1067_v59, %v1059_v43  ;;  %1039 = vmatprep.mubr.msk.f32.mxu1 %vm1077_vm0, %v1076_v0 }
 0x22a   : > { %1040 = vmatmul.mubr.msk.f32.vlgmr.msra.gmra.mrb[6].mxu1 %vm565_vm4, %v560_v60 }
 0x2f5   : > { %v639_v61 = vpop.f32.mrb[4].mxu0 }
 0x2f6   : > { %872 = vst.msk [vmem:[%s210_s27] sm:$0xf] %vm871_vm5, %v639_v61  ;;  %v1026_v62 = vpop.f32.mrb[5].mxu0 }
 0x2f9   : > { %v715_v63 = vpop.f32.mrb[4].mxu1 }
 0x2fa   : > { %873 = vst.msk [vmem:[%s210_s27 + $0x4] sm:$0xf] %vm871_vm5, %v715_v63  ;;  %v791_v1 = vpop.f32.mrb[6].mxu0  ;;  %v1031_v2 = vpop.f32.mrb[5].mxu1 }
 0x2fb   : > { %874 = vst.msk [vmem:[%s210_s27 + $0x8] sm:$0xf] %vm871_vm5, %v791_v1  ;;  %v1036_v3 = vpop.f32.mrb[7].mxu0 }
 0x2fd   : > { %v867_v4 = vpop.f32.mrb[6].mxu1 }
 0x2fe   : > { %875 = vst.msk [vmem:[%s210_s27 + $0xc] sm:$0xf] %vm871_vm5, %v867_v4  ;;  %v1041_v5 = vpop.f32.mrb[7].mxu1 }
 0x2ff PF: > { %s13_s12 = sadd.s32 1, %s1074_s12  }
 0x300   : > { %p10_p4 = scmp.ge.s32.totalorder %s13_s12, 4  }
 0x302   :  { %12 = sbr.rel (!%p10_p4) target bundleno = 1 (0x1), region = 68 }

// kernel: _lambda_.19
= control target key start
LH: loop header
LB: loop body
LE: loop exit
PB: predicated region body
PF: predicated region fallthrough
CT: control target
= control target key end

     0   :  { %v177_v0 = vmov 0.0|0.0   ;;  %vm178_vm0 = vmmov 0   ;;  %v179_v4 = vmov 0.0   ;;  %vm35_vm1 = vcmask 261120   ;;  %s249_s1 = inlined_call_operand.vmem [shape: f32[32,32], index: 1, kind: input, shape index: {}]   ;;  %s250_s0 = inlined_call_operand.vmem [shape: f32[8,32], index: 0, kind: input, shape index: {}]   ;;  %s251_s2 = inlined_call_operand.vmem [shape: f32[1,32], index: 2, kind: input, shape index: {}]   ;;  %s252_s3 = inlined_call_operand.vmem [shape: f32[8,32], index: 3, kind: input, shape index: {}]   ;;  %s253_s4 = inlined_call_operand.vmem [shape: f32[1,32], index: 4, kind: input, shape index: {}]   ;;  %s254_s5 = inlined_call_operand.vmem [shape: f32[1,32], index: 5, kind: input, shape index: {}]   ;;  %s255_s6 = inlined_call_operand.vmem [shape: f32[8,32], index: 6, kind: output, shape index: {}]  }
   0x1   :  { %166 = vmatprep.subr.bf16.mxu0 %v177_v0  ;;  %v24_v1 = vld [vmem:[%s249_s1] sm:$0xff]  ;;  %v25_v2 = vld [vmem:[%s249_s1 + $0x8] sm:$0xff]  ;;  %v26_v3 = vld [vmem:[%s249_s1 + $0x10] sm:$0xff]  ;;  %163 = vmatprep.mubr.msk.f32.mxu0 %vm178_vm0, %v179_v4 }
   0x2   :  { %v167_v5 = vpack.c.bf16 %v25_v2, %v24_v1  ;;  %v27_v6 = vld [vmem:[%s249_s1 + $0x18] sm:$0xff]  ;;  %v23_v8 = vld [vmem:[%s250_s0] sm:$0xff] }
   0x3   :  { %v170_v7 = vpack.c.bf16 %v27_v6, %v26_v3  ;;  %v146_v9 = vld [vmem:[%s251_s2] ss:$0 sm:$0xff] }
   0x4   :  { %168 = vmatpush3.bf16.msra.mxu0 %v167_v5  ;;  %v109_v11 = vld [vmem:[%s252_s3] sm:$0xff] }
   0x5   :  { %169 = vmatprep.subr.bf16.mxu0 %v177_v0  ;;  %v148_v25 = vld [vmem:[%s253_s4] ss:$0 sm:$0xff] }
   0x6   :  { %v149_v27 = vld [vmem:[%s254_s5] ss:$0 sm:$0xff] }
   0x8   :  { %171 = vmatpush3.bf16.msra.mxu0 %v170_v7 }
   0xb   :  { %164 = vmatmul.mubr.msk.f32.vlgmr.msra.gmra.mrb[0].mxu0 %vm35_vm1, %v23_v8 }
  0xde   :  { %v105_v10 = vpop.f32.mrb[0].mxu0 }
  0xdf   :  { %v106_v12 = vadd.f32 %v146_v9, %v105_v10  ;;  %v165_v13 = vpop.f32.mrb[1].mxu0 }
  0xe1   :  { %v110_v14 = vadd.f32 %v109_v11, %v106_v12 }
  0xe3   :  { %v111_v15 = vsel %vm35_vm1, %v110_v14, 0.0 }
  0xe4   :  { %112 = vadd.xlane.f32.xlu0 %v111_v15 }
 0x171   :  { %v113_v16 = vpop.xlane.xlu0 %112 }
 0x172   :  { %v115_v17 = vmul.f32 0.03125, %v113_v16 }
 0x174   :  { %v116_v18 = vsub.f32 %v110_v14, %v115_v17 }
 0x176   :  { %v117_v19 = vmul.f32 %v116_v18, %v116_v18 }
 0x178   :  { %v118_v20 = vsel %vm35_vm1, %v117_v19, 0.0 }
 0x179   :  { %119 = vadd.xlane.f32.xlu0 %v118_v20 }
 0x206   :  { %v120_v21 = vpop.xlane.xlu0 %119 }
 0x207   :  { %v121_v22 = vmul.f32 0.03125, %v120_v21 }
 0x209   :  { %v122_v23 = vadd.f32 1e-05, %v121_v22 }
 0x20b   :  { %175 = vrsqrt.f32 %v122_v23 }
 0x215   :  { %v176_v24 = vpop.eup %175 }
 0x216   :  { %v124_v26 = vmul.f32 %v176_v24, %v116_v18 }
 0x218   :  { %v132_v28 = vmul.f32 %v148_v25, %v124_v26 }
 0x21a   :  { %v140_v29 = vadd.f32 %v149_v27, %v132_v28 }
 0x21c   :  { %141 = vst.msk [vmem:[%s255_s6] sm:$0xff] %vm35_vm1, %v140_v29 }

// kernel: _lambda_.20
= control target key start
LH: loop header
LB: loop body
LE: loop exit
PB: predicated region body
PF: predicated region fallthrough
CT: control target
= control target key end

     0   :  { %v311_v0 = vmov 0.0|0.0   ;;  %vm312_vm0 = vmmov 0   ;;  %v313_v4 = vmov 0.0   ;;  %vm38_vm1 = vcmask 261120   ;;  %s412_s1 = inlined_call_operand.vmem [shape: f32[32,64], index: 1, kind: input, shape index: {}]   ;;  %s413_s3 = inlined_call_operand.vmem [shape: f32[64,32], index: 3, kind: input, shape index: {}]   ;;  %s414_s0 = inlined_call_operand.vmem [shape: f32[8,32], index: 0, kind: input, shape index: {}]   ;;  %s415_s2 = inlined_call_operand.vmem [shape: f32[1,64], index: 2, kind: input, shape index: {}]   ;;  %s416_s4 = inlined_call_operand.vmem [shape: f32[1,32], index: 4, kind: input, shape index: {}]   ;;  %s417_s5 = inlined_call_operand.vmem [shape: f32[1,32], index: 5, kind: input, shape index: {}]   ;;  %s418_s6 = inlined_call_operand.vmem [shape: f32[1,32], index: 6, kind: input, shape index: {}]   ;;  %s419_s7 = inlined_call_operand.vmem [shape: f32[8,32], index: 7, kind: output, shape index: {}]  }
   0x1   :  { %288 = vmatprep.subr.bf16.mxu0 %v311_v0  ;;  %v27_v1 = vld [vmem:[%s412_s1] sm:$0xff]  ;;  %v28_v2 = vld [vmem:[%s412_s1 + $0x8] sm:$0xff]  ;;  %v29_v3 = vld [vmem:[%s412_s1 + $0x10] sm:$0xff]  ;;  %266 = vmatprep.mubr.msk.f32.mxu0 %vm312_vm0, %v313_v4  ;;  %vm128_vm2 = vcmask 523264  }
   0x2   :  { %v289_v5 = vpack.c.bf16 %v28_v2, %v27_v1  ;;  %v30_v6 = vld [vmem:[%s412_s1 + $0x18] sm:$0xff]  ;;  %294 = vmatprep.subr.bf16.mxu1 %v311_v0  ;;  %v113_v7 = vld [vmem:[%s413_s3] sm:$0xff]  ;;  %285 = vmatprep.mubr.msk.f32.mxu1 %vm312_vm0, %v313_v4  ;;  %v114_v8 = vld [vmem:[%s413_s3 + $0x8] sm:$0xff] }
   0x3   :  { %v115_v9 = vld [vmem:[%s413_s3 + $0x10] sm:$0xff]  ;;  %v116_v10 = vld [vmem:[%s413_s3 + $0x18] sm:$0xff]  ;;  %v292_v11 = vpack.c.bf16 %v30_v6, %v29_v3  ;;  %v295_v12 = vpack.c.bf16 %v114_v8, %v113_v7  ;;  %v117_v14 = vld [vmem:[%s413_s3 + $0x20] sm:$0xff] }
   0x4   :  { %290 = vmatpush3.bf16.msra.mxu0 %v289_v5  ;;  %v298_v13 = vpack.c.bf16 %v116_v10, %v115_v9  ;;  %v118_v15 = vld [vmem:[%s413_s3 + $0x28] sm:$0xff]  ;;  %v26_v16 = vld [vmem:[%s414_s0] sm:$0xff]  ;;  %v119_v18 = vld [vmem:[%s413_s3 + $0x30] sm:$0xff] }
   0x5   :  { %291 = vmatprep.subr.bf16.mxu0 %v311_v0  ;;  %296 = vmatpush3.bf16.msra.mxu1 %v295_v12  ;;  %v301_v17 = vpack.c.bf16 %v118_v15, %v117_v14  ;;  %v120_v19 = vld [vmem:[%s413_s3 + $0x38] sm:$0xff]  ;;  %v238_v21 = vld [vmem:[%s415_s2] ss:$0 sm:$0xff] }
   0x6   :  { %297 = vmatprep.subr.bf16.mxu1 %v311_v0  ;;  %v304_v20 = vpack.c.bf16 %v120_v19, %v119_v18  ;;  %v240_v26 = vld [vmem:[%s416_s4] ss:$0 sm:$0xff] }
   0x7   :  { %v242_v41 = vld [vmem:[%s417_s5] ss:$0 sm:$0xff] }
   0x8   :  { %293 = vmatpush3.bf16.msra.mxu0 %v292_v11  ;;  %v243_v43 = vld [vmem:[%s418_s6] ss:$0 sm:$0xff] }
   0x9   :  { %299 = vmatpush3.bf16.msra.mxu1 %v298_v13 }
   0xa   :  { %300 = vmatprep.subr.bf16.mxu1 %v311_v0 }
   0xb   :  { %267 = vmatmul.mubr.msk.f32.vlgmr.msra.gmra.mrb[0].mxu0 %vm38_vm1, %v26_v16 }
   0xd   :  { %302 = vmatpush3.bf16.msra.mxu1 %v301_v17 }
   0xe   :  { %303 = vmatprep.subr.bf16.mxu1 %v311_v0 }
  0x11   :  { %305 = vmatpush3.bf16.msra.mxu1 %v304_v20 }
  0xde   :  { %v108_v22 = vpop.f32.mrb[0].mxu0 }
  0xdf   :  { %v109_v23 = vadd.f32 %v238_v21, %v108_v22  ;;  %v268_v24 = vpop.f32.mrb[1].mxu0 }
  0xe1   :  { %v112_v25 = vmax.f32 %v109_v23, 0.0 }
  0xe3   :  { %286 = vmatmul.mubr.msk.f32.vlgmr.msra.gmra.mrb[0].mxu1 %vm128_vm2, %v112_v25 }
 0x1b6   :  { %v198_v27 = vpop.f32.mrb[0].mxu1 }
 0x1b7   :  { %v199_v28 = vadd.f32 %v240_v26, %v198_v27  ;;  %v287_v29 = vpop.f32.mrb[1].mxu1 }
 0x1b9   :  { %v202_v30 = vadd.f32 %v199_v28, %v26_v16 }
 0x1bb   :  { %v203_v31 = vsel %vm38_vm1, %v202_v30, 0.0 }
 0x1bc   :  { %204 = vadd.xlane.f32.xlu0 %v203_v31 }
 0x249   :  { %v205_v32 = vpop.xlane.xlu0 %204 }
 0x24a   :  { %v207_v33 = vmul.f32 0.03125, %v205_v32 }
 0x24c   :  { %v208_v34 = vsub.f32 %v202_v30, %v207_v33 }
 0x24e   :  { %v209_v35 = vmul.f32 %v208_v34, %v208_v34 }
 0x250   :  { %v210_v36 = vsel %vm38_vm1, %v209_v35, 0.0 }
 0x251   :  { %211 = vadd.xlane.f32.xlu0 %v210_v36 }
 0x2de   :  { %v212_v37 = vpop.xlane.xlu0 %211 }
 0x2df   :  { %v213_v38 = vmul.f32 0.03125, %v212_v37 }
 0x2e1   :  { %v214_v39 = vadd.f32 1e-05, %v213_v38 }
 0x2e3   :  { %309 = vrsqrt.f32 %v214_v39 }
 0x2ed   :  { %v310_v40 = vpop.eup %309 }
 0x2ee   :  { %v216_v42 = vmul.f32 %v310_v40, %v208_v34 }
 0x2f0   :  { %v224_v44 = vmul.f32 %v242_v41, %v216_v42 }
 0x2f2   :  { %v232_v45 = vadd.f32 %v243_v43, %v224_v44 }
 0x2f4   :  { %233 = vst.msk [vmem:[%s419_s7] sm:$0xff] %vm38_vm1, %v232_v45 }

// kernel: _lambda_.21
= control target key start
LH: loop header
LB: loop body
LE: loop exit
PB: predicated region body
PF: predicated region fallthrough
CT: control target
= control target key end

     0   :  { %vm16_vm0 = vcmask 261120   ;;  %s136_s0 = inlined_call_operand.vmem [shape: f32[8,32], index: 0, kind: input, shape index: {}]   ;;  %s137_s1 = inlined_call_operand.vmem [shape: f32[1,32], index: 1, kind: input, shape index: {}]   ;;  %s138_s2 = inlined_call_operand.vmem [shape: f32[1,32], index: 2, kind: input, shape index: {}]   ;;  %s139_s3 = inlined_call_operand.hbm [shape: f32[8,32], index: 3, kind: output, shape index: {}]  }
   0x1   :  { %v15_v0 = vld [vmem:[%s136_s0] sm:$0xff] }
   0x2   :  { %8 = vsyncpa [#allocation3], 0  ;;  %v17_v1 = vsel %vm16_vm0, %v15_v0, 0.0  ;;  %v62_v11 = vld [vmem:[%s137_s1] ss:$0 sm:$0xff]  ;;  %s91_s17 = smov [#allocation2]  }
   0x3   :  { %18 = vadd.xlane.f32.xlu0 %v17_v1  ;;  %v63_v13 = vld [vmem:[%s138_s2] ss:$0 sm:$0xff]  ;;  %s54_s18 = sshll.u32 %s91_s17, 4  ;;  %s55_s18 = int_to_ptr.vmem [resolvable:$true] %s54_s18 }
   0x4   :  { %s67_s19 = scalar_lea.vmem %s55_s18, 128  ;;  %p72_p1 = scmp.lt.s32.totalorder %s55_s18, %s55_s18 }
   0x5   :  { %p68_p0 = scmp.ne.s32.totalorder %s55_s18, %s67_s19  ;;  %p73_p2 = scmp.lt.s32.totalorder %s67_s19, %s67_s19 }
   0x7   :  { %p74_p3 = por %p73_p2, %p72_p1 }
   0x9   :  { %p75_p4 = pnand %p74_p3, %p68_p0 }
  0x90   :  { %v19_v2 = vpop.xlane.xlu0 %18 }
  0x91   :  { %v21_v3 = vmul.f32 0.03125, %v19_v2 }
  0x93   :  { %v22_v4 = vsub.f32 %v15_v0, %v21_v3 }
  0x95   :  { %v23_v5 = vmul.f32 %v22_v4, %v22_v4 }
  0x97   :  { %v24_v6 = vsel %vm16_vm0, %v23_v5, 0.0 }
  0x98   :  { %25 = vadd.xlane.f32.xlu0 %v24_v6 }
 0x125   :  { %v26_v7 = vpop.xlane.xlu0 %25 }
 0x126   :  { %v27_v8 = vmul.f32 0.03125, %v26_v7 }
 0x128   :  { %v28_v9 = vadd.f32 1e-05, %v27_v8 }
 0x12a   :  { %65 = vrsqrt.f32 %v28_v9 }
 0x134   :  { %v66_v10 = vpop.eup %65 }
 0x135   :  { %v30_v12 = vmul.f32 %v66_v10, %v22_v4 }
 0x137   :  { %v38_v14 = vmul.f32 %v62_v11, %v30_v12 }
 0x139   :  { %v46_v15 = vadd.f32 %v63_v13, %v38_v14 }
 0x13b   :  { %47 = vst.msk [vmem:[#allocation2] sm:$0xff] %vm16_vm0, %v46_v15 }
 0x13c   :  { %78 = shalt.err (!%p75_p4)
}
 0x13d   :  { %s79_s21 = scalar_lea.hbm %s139_s3, 128 }
 0x13e   :  { %p80_p5 = scmp.ne.s32.totalorder %s139_s3, %s79_s21  ;;  %p83_p6 = scmp.lt.u32.totalorder %s79_s21, %s139_s3 }
 0x140   :  { %p85_p7 = pnand %p83_p6, %p80_p5 }
 0x142   :  { %88 = shalt.err (!%p85_p7)
}
 0x143   :  { %57 = dma.vmem_to_hbm [thread:$0]  %s55_s18, 128, %s139_s3, [#allocation3]  }
 0x144   :  { %89 = dma.done.wait [#allocation3], 128  }
 0x145   :  { %90 = vsyncadd [#allocation3], 4294967168 }
 0x146   :  { %61 = vsyncpa [#allocation3], 1 }

</bundles_post_ra>
